<compile_context>
chip_gen: v7x
topology: tpu7x:2x2x1
jax: 0.10.0
libtpu: 0.0.40
codegen_flags: <defaults>
</compile_context>

<pallas_src>
import functools

import numpy as np
import jax
import jax.numpy as jnp
from jax import lax
from jax.experimental import pallas as pl
from jax.experimental.pallas import tpu as pltpu


def _round_up(x, m):
    return ((x + m - 1) // m) * m


def _cfm_fused_kernel(x1_ref, x2_ref, w_ref, cmask_ref, o_ref,
                      pad_ref, patch_ref, *,
                      H, W, dilation, pad_lanes, slope, eps, cin1, nb):
    # x1_ref    : (nb, Cin1p, HW)       branch-1 input, lane-dense
    # x2_ref    : (nb, Cin2p, HW)       branch-2 input, lane-dense
    # w_ref     : (Ctot, 9*Cin_tot)     block-diagonal im2col weight matrix
    # cmask_ref : (2, HW)               column-wrap validity masks (kx=0, kx=2)
    # o_ref     : (nb, Ctot, HW)        concatenated, lane-dense output
    # pad_ref   : (nb, Cin_tot, Lpad)   flat halo-padded scratch (both branches)
    # patch_ref : (9*Cin_tot, nb*HW)    im2col patch scratch (single matmul RHS)
    HW = H * W
    cin_tot = pad_ref.shape[1]
    cdt = patch_ref.dtype

    # Hoisted constants (JAX does not CSE broadcasts inside loops).
    side_zeros = jnp.zeros((cin_tot, pad_lanes), cdt)
    m0 = cmask_ref[0:1, :]          # mask for kx = 0
    m2 = cmask_ref[1:2, :]          # mask for kx = 2

    # ---- in-kernel halo padding; the channel concat of x1/x2 is free here ----
    for b in range(nb):
        # NOTE(perf review): only dilation*(W+1) lanes/side are ever read, but
        # pad_lanes is already the minimal 128-aligned cover of that halo;
        # narrower zero stores would just become lane-misaligned masked stores
        # for no bandwidth win, so the aligned full-side stores are kept.
        pad_ref[b, :, 0:pad_lanes] = side_zeros
        pad_ref[b, :, pad_lanes + HW:2 * pad_lanes + HW] = side_zeros
        pad_ref[b, 0:cin1, pad_lanes:pad_lanes + HW] = x1_ref[b]
        pad_ref[b, cin1:cin_tot, pad_lanes:pad_lanes + HW] = x2_ref[b]

    # ---- im2col patch build: 9 lane-shifted slabs per sample, stored straight
    # into the persistent patch scratch (no jnp.concatenate anywhere). ----
    for b in range(nb):
        for ky in range(3):
            for kx in range(3):
                t = ky * 3 + kx
                shift = (ky - 1) * dilation * W + (kx - 1) * dilation
                start = pad_lanes + shift
                slab = pad_ref[b, :, start:start + HW]        # (Cin_tot, HW)
                if kx == 0:
                    slab = slab * m0     # zero columns wrapped across rows
                elif kx == 2:
                    slab = slab * m2
                patch_ref[t * cin_tot:(t + 1) * cin_tot,
                          b * HW:(b + 1) * HW] = slab

    # ---- ONE block-diagonal MXU matmul for BOTH conv branches ----
    acc = jnp.dot(w_ref[...], patch_ref[...],
                  preferred_element_type=jnp.float32)         # (Ctot, nb*HW) f32

    # ---- per-sample InstanceNorm2d (affine=False, biased var) + LeakyReLU ----
    # Conv bias omitted: cancelled exactly by the mean subtraction.
    # Two-pass (centered) variance, all statistics in f32.
    inv_hw = 1.0 / HW
    for b in range(nb):
        seg = acc[:, b * HW:(b + 1) * HW]                     # (Ctot, HW)
        mean = jnp.sum(seg, axis=1, keepdims=True) * inv_hw
        cen = seg - mean
        var = jnp.sum(cen * cen, axis=1, keepdims=True) * inv_hw
        y = cen * lax.rsqrt(var + eps)
        y = jnp.where(y >= 0, y, slope * y)
        o_ref[b] = y.astype(o_ref.dtype)


def cfm_forward(x1, x2, w1, w2, *, dilation=1, slope=0.1, eps=1e-5,
                compute_dtype=jnp.float32, samples_per_block=None):
    """CFM.forward: conv1/conv2 (3x3, padding=dilation, dilation=dilation) +
    InstanceNorm2d + concat(dim=1) + LeakyReLU.  NCHW in/out, OIHW weights.
    Conv biases are not needed (exactly cancelled by the InstanceNorm)."""
    N, Cin1, H, W = x1.shape
    N2, Cin2, H2, W2 = x2.shape
    assert (N, H, W) == (N2, H2, W2)
    Cout1, Cout2 = w1.shape[0], w2.shape[0]
    Ctot = Cout1 + Cout2
    HW = H * W

    # Round input-channel counts up to the sublane tile (8) so every in-kernel
    # scratch slice starts on an (8,128)-aligned boundary.  The real CFM uses
    # (128, 384) channels, so this is a no-op in practice.
    Cin1p, Cin2p = _round_up(Cin1, 8), _round_up(Cin2, 8)
    Cin_tot = Cin1p + Cin2p
    if Cin1p != Cin1:
        x1 = jnp.pad(x1, ((0, 0), (0, Cin1p - Cin1), (0, 0), (0, 0)))
        w1 = jnp.pad(w1, ((0, 0), (0, Cin1p - Cin1), (0, 0), (0, 0)))
    if Cin2p != Cin2:
        x2 = jnp.pad(x2, ((0, 0), (0, Cin2p - Cin2), (0, 0), (0, 0)))
        w2 = jnp.pad(w2, ((0, 0), (0, Cin2p - Cin2), (0, 0), (0, 0)))

    # Samples per grid step: target >= 512 output lanes per step (per-step
    # overhead dominates small blocks), keep it a divisor of N and keep the
    # per-sample lane offsets 128-aligned.
    if samples_per_block is None:
        nb = 1
        if HW % 128 == 0:
            target = max(1, -(-512 // HW))                 # ceil(512 / HW)
            for cand in range(1, min(N, 8) + 1):
                if N % cand == 0 and cand <= target:
                    nb = cand
    else:
        nb = samples_per_block
    assert N % nb == 0

    # Lane-dense flattening (free contiguous reshapes, no transposes) and the
    # MXU-operand cast (bf16 halves HBM bytes / VMEM; accumulation stays f32).
    x1f = x1.reshape(N, Cin1p, HW).astype(compute_dtype)
    x2f = x2.reshape(N, Cin2p, HW).astype(compute_dtype)

    # Block-diagonal im2col weight matrix: one (Ctot, 9*Cin_tot) operand drives
    # both branches in a single matmul and makes the channel concat free.
    # Tap-major (ky, kx) ordering; within each tap: [branch-1 ch | branch-2 ch].
    w1t = jnp.transpose(w1, (0, 2, 3, 1)).reshape(Cout1, 9, Cin1p)
    w2t = jnp.transpose(w2, (0, 2, 3, 1)).reshape(Cout2, 9, Cin2p)
    w_blk = jnp.zeros((Ctot, 9, Cin_tot), jnp.float32)
    w_blk = w_blk.at[:Cout1, :, :Cin1p].set(w1t)
    w_blk = w_blk.at[Cout1:, :, Cin1p:].set(w2t)
    w_blk = w_blk.reshape(Ctot, 9 * Cin_tot).astype(compute_dtype)

    # Column-wrap validity masks (host constants) for kx = 0 and kx = 2.
    xpos = np.arange(HW) % W
    cmask = jnp.asarray(np.stack(
        [(xpos - dilation >= 0), (xpos + dilation < W)],
        axis=0).astype(np.float32)).astype(compute_dtype)          # (2, HW)

    # Flat halo, rounded up to a 128-lane multiple so interior/zero stores are
    # tile-aligned; tap reads are plain lane-offset slices of the pad scratch.
    halo = dilation * (W + 1)
    pad_lanes = _round_up(halo, 128)
    Lpad = HW + 2 * pad_lanes

    kernel = functools.partial(
        _cfm_fused_kernel, H=H, W=W, dilation=dilation, pad_lanes=pad_lanes,
        slope=slope, eps=eps, cin1=Cin1p, nb=nb)

    out = pl.pallas_call(
        kernel,
        out_shape=jax.ShapeDtypeStruct((N, Ctot, HW), jnp.float32),
        grid_spec=pltpu.PrefetchScalarGridSpec(
            num_scalar_prefetch=0,
            grid=(N // nb,),
            in_specs=[
                pl.BlockSpec((nb, Cin1p, HW), lambda n: (n, 0, 0)),
                pl.BlockSpec((nb, Cin2p, HW), lambda n: (n, 0, 0)),
                # grid-invariant operands (constant index_map -> DMA'd once).
                pl.BlockSpec((Ctot, 9 * Cin_tot), lambda n: (0, 0)),
                pl.BlockSpec((2, HW), lambda n: (0, 0)),
            ],
            out_specs=pl.BlockSpec((nb, Ctot, HW), lambda n: (n, 0, 0)),
            scratch_shapes=[
                pltpu.VMEM((nb, Cin_tot, Lpad), compute_dtype),   # halo pad
                pltpu.VMEM((9 * Cin_tot, nb * HW), compute_dtype),  # im2col
            ],
        ),
        compiler_params=pltpu.CompilerParams(
            dimension_semantics=("parallel",),
        ),
    )(x1f, x2f, w_blk, cmask)

    # Contiguous, free reshape back to NCHW (no transpose needed).
    return out.reshape(N, Ctot, H, W)


# ---------------- plain-JAX reference (for correctness check) ----------------
def _ref_branch(x, w, b, *, dilation=1, slope=0.1, eps=1e-5):
    pad = dilation
    y = lax.conv_general_dilated(
        x, w,
        window_strides=(1, 1),
        padding=[(pad, pad), (pad, pad)],
        rhs_dilation=(dilation, dilation),
        dimension_numbers=("NCHW", "OIHW", "NCHW"),
        precision=lax.Precision.HIGHEST,
    ) + b[None, :, None, None]
    mean = jnp.mean(y, axis=(2, 3), keepdims=True)
    var = jnp.mean((y - mean) ** 2, axis=(2, 3), keepdims=True)
    y = (y - mean) * lax.rsqrt(var + eps)
    return jnp.where(y >= 0, y, slope * y)


def _ref_forward(x1, x2, w1, b1, w2, b2, *, dilation=1, slope=0.1):
    o1 = _ref_branch(x1, w1, b1, dilation=dilation, slope=slope)
    o2 = _ref_branch(x2, w2, b2, dilation=dilation, slope=slope)
    return jnp.concatenate([o1, o2], axis=1)


if __name__ == "__main__":
    # Small shapes consistent with Single_Model's CFM(128, 384, 128, 384),
    # scaled down 16x (same 1:3 channel ratio).
    N, H, W = 2, 16, 16
    in_ch1, in_ch2 = 8, 24
    out_ch1, out_ch2 = 8, 24
    dilation_rate = 1
    slope = 0.1

    key = jax.random.PRNGKey(0)
    k1, k2, k3, k4, k5, k6 = jax.random.split(key, 6)

    # PyTorch-layout (OIHW) weights; biases only feed the reference (the kernel
    # drops them - InstanceNorm cancels a per-channel conv bias exactly).
    w1 = (0.1 * jax.random.normal(k1, (out_ch1, in_ch1, 3, 3))).astype(jnp.float32)
    b1 = (0.1 * jax.random.normal(k2, (out_ch1,))).astype(jnp.float32)
    w2 = (0.1 * jax.random.normal(k3, (out_ch2, in_ch2, 3, 3))).astype(jnp.float32)
    b2 = (0.1 * jax.random.normal(k4, (out_ch2,))).astype(jnp.float32)

    x1 = jax.random.normal(k5, (N, in_ch1, H, W), dtype=jnp.float32)
    x2 = jax.random.normal(k6, (N, in_ch2, H, W), dtype=jnp.float32)

    ref = jax.block_until_ready(
        _ref_forward(x1, x2, w1, b1, w2, b2, dilation=dilation_rate, slope=slope))

    # --- f32 path: exact semantics of the PyTorch module ---
    fwd_f32 = jax.jit(functools.partial(
        cfm_forward, dilation=dilation_rate, slope=slope))
    out_f32 = jax.block_until_ready(fwd_f32(x1, x2, w1, w2))
    assert out_f32.shape == (N, out_ch1 + out_ch2, H, W), out_f32.shape
    max_err = float(jnp.max(jnp.abs(out_f32 - ref)))
    assert jnp.allclose(out_f32, ref, atol=2e-4, rtol=2e-4), max_err

    # --- bf16 MXU-operand path (per perf review): f32 accumulation + f32 IN ---
    fwd_bf16 = jax.jit(functools.partial(
        cfm_forward, dilation=dilation_rate, slope=slope,
        compute_dtype=jnp.bfloat16))
    out_bf16 = jax.block_until_ready(fwd_bf16(x1, x2, w1, w2))
    rel_rms = float(jnp.sqrt(jnp.mean((out_bf16 - ref) ** 2) /
                             jnp.mean(ref ** 2)))
    assert rel_rms < 5e-2, rel_rms

    print("KERNEL_OK")
</pallas_src>

<mosaic_0001>
module attributes {stable_mosaic.version = 11 : i64} {
  func.func @_cfm_fused_kernel(%arg0: i32, %arg1: memref<2x8x256xf32, #tpu.memory_space<vmem>>, %arg2: memref<2x24x256xf32, #tpu.memory_space<vmem>>, %arg3: memref<32x288xf32, #tpu.memory_space<vmem>>, %arg4: memref<2x256xf32, #tpu.memory_space<vmem>>, %arg5: memref<2x32x256xf32, #tpu.memory_space<vmem>>, %arg6: memref<2x32x512xf32, #tpu.memory_space<vmem>>, %arg7: memref<288x512xf32, #tpu.memory_space<vmem>>) attributes {dimension_semantics = [#tpu.dimension_semantics<parallel>], iteration_bounds = array<i64: 1>, scalar_prefetch = 0 : i64, scratch_operands = 2 : i64, tpu.core_type = #tpu.core_type<tc>, window_params = [{transform_indices = @transform_0, window_bounds = array<i64: 2, 8, 256>}, {transform_indices = @transform_1, window_bounds = array<i64: 2, 24, 256>}, {pipeline_mode = #tpu.pipeline_mode<synchronous>, transform_indices = @transform_2, window_bounds = array<i64: 32, 288>}, {pipeline_mode = #tpu.pipeline_mode<synchronous>, transform_indices = @transform_3, window_bounds = array<i64: 2, 256>}, {transform_indices = @transform_4, window_bounds = array<i64: 2, 32, 256>}]} {
    %cst = arith.constant 0.000000e+00 : f32
    %0 = vector.broadcast %cst : f32 to vector<32x128xf32>
    %c0 = arith.constant 0 : index
    %c0_0 = arith.constant 0 : index
    %1 = vector.load %arg4[%c0, %c0_0] : memref<2x256xf32, #tpu.memory_space<vmem>>, vector<1x256xf32>
    %c1 = arith.constant 1 : index
    %c0_1 = arith.constant 0 : index
    %2 = vector.load %arg4[%c1, %c0_1] : memref<2x256xf32, #tpu.memory_space<vmem>>, vector<1x256xf32>
    %c0_2 = arith.constant 0 : index
    %c0_3 = arith.constant 0 : index
    %c0_4 = arith.constant 0 : index
    %3 = vector.load %arg6[%c0_2, %c0_3, %c0_4] : memref<2x32x512xf32, #tpu.memory_space<vmem>>, vector<1x32x128xf32>
    %4 = vector.shape_cast %3 : vector<1x32x128xf32> to vector<32x128xf32>
    %5 = vector.shape_cast %0 : vector<32x128xf32> to vector<1x32x128xf32>
    tpu.vector_store %arg6[%c0_2, %c0_3, %c0_4], %5 {strides = array<i32>} : memref<2x32x512xf32, #tpu.memory_space<vmem>>, vector<1x32x128xf32>,
    %c0_5 = arith.constant 0 : index
    %c0_6 = arith.constant 0 : index
    %c384 = arith.constant 384 : index
    %6 = vector.load %arg6[%c0_5, %c0_6, %c384] : memref<2x32x512xf32, #tpu.memory_space<vmem>>, vector<1x32x128xf32>
    %7 = vector.shape_cast %6 : vector<1x32x128xf32> to vector<32x128xf32>
    %8 = vector.shape_cast %0 : vector<32x128xf32> to vector<1x32x128xf32>
    tpu.vector_store %arg6[%c0_5, %c0_6, %c384], %8 {strides = array<i32>} : memref<2x32x512xf32, #tpu.memory_space<vmem>>, vector<1x32x128xf32>,
    %c0_7 = arith.constant 0 : index
    %c0_8 = arith.constant 0 : index
    %c0_9 = arith.constant 0 : index
    %9 = vector.load %arg1[%c0_7, %c0_8, %c0_9] : memref<2x8x256xf32, #tpu.memory_space<vmem>>, vector<1x8x256xf32>
    %10 = vector.shape_cast %9 : vector<1x8x256xf32> to vector<8x256xf32>
    %c0_10 = arith.constant 0 : index
    %c0_11 = arith.constant 0 : index
    %c128 = arith.constant 128 : index
    %11 = vector.load %arg6[%c0_10, %c0_11, %c128] : memref<2x32x512xf32, #tpu.memory_space<vmem>>, vector<1x8x256xf32>
    %12 = vector.shape_cast %11 : vector<1x8x256xf32> to vector<8x256xf32>
    %13 = vector.shape_cast %10 : vector<8x256xf32> to vector<1x8x256xf32>
    tpu.vector_store %arg6[%c0_10, %c0_11, %c128], %13 {strides = array<i32>} : memref<2x32x512xf32, #tpu.memory_space<vmem>>, vector<1x8x256xf32>,
    %c0_12 = arith.constant 0 : index
    %c0_13 = arith.constant 0 : index
    %c0_14 = arith.constant 0 : index
    %14 = vector.load %arg2[%c0_12, %c0_13, %c0_14] : memref<2x24x256xf32, #tpu.memory_space<vmem>>, vector<1x24x256xf32>
    %15 = vector.shape_cast %14 : vector<1x24x256xf32> to vector<24x256xf32>
    %c0_15 = arith.constant 0 : index
    %c8 = arith.constant 8 : index
    %c128_16 = arith.constant 128 : index
    %16 = vector.load %arg6[%c0_15, %c8, %c128_16] : memref<2x32x512xf32, #tpu.memory_space<vmem>>, vector<1x24x256xf32>
    %17 = vector.shape_cast %16 : vector<1x24x256xf32> to vector<24x256xf32>
    %18 = vector.shape_cast %15 : vector<24x256xf32> to vector<1x24x256xf32>
    tpu.vector_store %arg6[%c0_15, %c8, %c128_16], %18 {strides = array<i32>} : memref<2x32x512xf32, #tpu.memory_space<vmem>>, vector<1x24x256xf32>,
    %c1_17 = arith.constant 1 : index
    %c0_18 = arith.constant 0 : index
    %c0_19 = arith.constant 0 : index
    %19 = vector.load %arg6[%c1_17, %c0_18, %c0_19] : memref<2x32x512xf32, #tpu.memory_space<vmem>>, vector<1x32x128xf32>
    %20 = vector.shape_cast %19 : vector<1x32x128xf32> to vector<32x128xf32>
    %21 = vector.shape_cast %0 : vector<32x128xf32> to vector<1x32x128xf32>
    tpu.vector_store %arg6[%c1_17, %c0_18, %c0_19], %21 {strides = array<i32>} : memref<2x32x512xf32, #tpu.memory_space<vmem>>, vector<1x32x128xf32>,
    %c1_20 = arith.constant 1 : index
    %c0_21 = arith.constant 0 : index
    %c384_22 = arith.constant 384 : index
    %22 = vector.load %arg6[%c1_20, %c0_21, %c384_22] : memref<2x32x512xf32, #tpu.memory_space<vmem>>, vector<1x32x128xf32>
    %23 = vector.shape_cast %22 : vector<1x32x128xf32> to vector<32x128xf32>
    %24 = vector.shape_cast %0 : vector<32x128xf32> to vector<1x32x128xf32>
    tpu.vector_store %arg6[%c1_20, %c0_21, %c384_22], %24 {strides = array<i32>} : memref<2x32x512xf32, #tpu.memory_space<vmem>>, vector<1x32x128xf32>,
    %c1_23 = arith.constant 1 : index
    %c0_24 = arith.constant 0 : index
    %c0_25 = arith.constant 0 : index
    %25 = vector.load %arg1[%c1_23, %c0_24, %c0_25] : memref<2x8x256xf32, #tpu.memory_space<vmem>>, vector<1x8x256xf32>
    %26 = vector.shape_cast %25 : vector<1x8x256xf32> to vector<8x256xf32>
    %c1_26 = arith.constant 1 : index
    %c0_27 = arith.constant 0 : index
    %c128_28 = arith.constant 128 : index
    %27 = vector.load %arg6[%c1_26, %c0_27, %c128_28] : memref<2x32x512xf32, #tpu.memory_space<vmem>>, vector<1x8x256xf32>
    %28 = vector.shape_cast %27 : vector<1x8x256xf32> to vector<8x256xf32>
    %29 = vector.shape_cast %26 : vector<8x256xf32> to vector<1x8x256xf32>
    tpu.vector_store %arg6[%c1_26, %c0_27, %c128_28], %29 {strides = array<i32>} : memref<2x32x512xf32, #tpu.memory_space<vmem>>, vector<1x8x256xf32>,
    %c1_29 = arith.constant 1 : index
    %c0_30 = arith.constant 0 : index
    %c0_31 = arith.constant 0 : index
    %30 = vector.load %arg2[%c1_29, %c0_30, %c0_31] : memref<2x24x256xf32, #tpu.memory_space<vmem>>, vector<1x24x256xf32>
    %31 = vector.shape_cast %30 : vector<1x24x256xf32> to vector<24x256xf32>
    %c1_32 = arith.constant 1 : index
    %c8_33 = arith.constant 8 : index
    %c128_34 = arith.constant 128 : index
    %32 = vector.load %arg6[%c1_32, %c8_33, %c128_34] : memref<2x32x512xf32, #tpu.memory_space<vmem>>, vector<1x24x256xf32>
    %33 = vector.shape_cast %32 : vector<1x24x256xf32> to vector<24x256xf32>
    %34 = vector.shape_cast %31 : vector<24x256xf32> to vector<1x24x256xf32>
    tpu.vector_store %arg6[%c1_32, %c8_33, %c128_34], %34 {strides = array<i32>} : memref<2x32x512xf32, #tpu.memory_space<vmem>>, vector<1x24x256xf32>,
    %c0_35 = arith.constant 0 : index
    %c0_36 = arith.constant 0 : index
    %c111 = arith.constant 111 : index
    %35 = vector.load %arg6[%c0_35, %c0_36, %c111] : memref<2x32x512xf32, #tpu.memory_space<vmem>>, vector<1x32x256xf32>
    %36 = vector.shape_cast %35 : vector<1x32x256xf32> to vector<32x256xf32>
    %37 = vector.broadcast %1 : vector<1x256xf32> to vector<32x256xf32>
    %38 = arith.mulf %36, %37 : vector<32x256xf32>
    %c0_37 = arith.constant 0 : index
    %c0_38 = arith.constant 0 : index
    %39 = vector.load %arg7[%c0_37, %c0_38] : memref<288x512xf32, #tpu.memory_space<vmem>>, vector<32x256xf32>
    tpu.vector_store %arg7[%c0_37, %c0_38], %38 {strides = array<i32>} : memref<288x512xf32, #tpu.memory_space<vmem>>, vector<32x256xf32>,
    %c0_39 = arith.constant 0 : index
    %c0_40 = arith.constant 0 : index
    %c112 = arith.constant 112 : index
    %40 = vector.load %arg6[%c0_39, %c0_40, %c112] : memref<2x32x512xf32, #tpu.memory_space<vmem>>, vector<1x32x256xf32>
    %41 = vector.shape_cast %40 : vector<1x32x256xf32> to vector<32x256xf32>
    %c32 = arith.constant 32 : index
    %c0_41 = arith.constant 0 : index
    %42 = vector.load %arg7[%c32, %c0_41] : memref<288x512xf32, #tpu.memory_space<vmem>>, vector<32x256xf32>
    tpu.vector_store %arg7[%c32, %c0_41], %41 {strides = array<i32>} : memref<288x512xf32, #tpu.memory_space<vmem>>, vector<32x256xf32>,
    %c0_42 = arith.constant 0 : index
    %c0_43 = arith.constant 0 : index
    %c113 = arith.constant 113 : index
    %43 = vector.load %arg6[%c0_42, %c0_43, %c113] : memref<2x32x512xf32, #tpu.memory_space<vmem>>, vector<1x32x256xf32>
    %44 = vector.shape_cast %43 : vector<1x32x256xf32> to vector<32x256xf32>
    %45 = vector.broadcast %2 : vector<1x256xf32> to vector<32x256xf32>
    %46 = arith.mulf %44, %45 : vector<32x256xf32>
    %c64 = arith.constant 64 : index
    %c0_44 = arith.constant 0 : index
    %47 = vector.load %arg7[%c64, %c0_44] : memref<288x512xf32, #tpu.memory_space<vmem>>, vector<32x256xf32>
    tpu.vector_store %arg7[%c64, %c0_44], %46 {strides = array<i32>} : memref<288x512xf32, #tpu.memory_space<vmem>>, vector<32x256xf32>,
    %c0_45 = arith.constant 0 : index
    %c0_46 = arith.constant 0 : index
    %c127 = arith.constant 127 : index
    %48 = vector.load %arg6[%c0_45, %c0_46, %c127] : memref<2x32x512xf32, #tpu.memory_space<vmem>>, vector<1x32x256xf32>
    %49 = vector.shape_cast %48 : vector<1x32x256xf32> to vector<32x256xf32>
    %50 = vector.broadcast %1 : vector<1x256xf32> to vector<32x256xf32>
    %51 = arith.mulf %49, %50 : vector<32x256xf32>
    %c96 = arith.constant 96 : index
    %c0_47 = arith.constant 0 : index
    %52 = vector.load %arg7[%c96, %c0_47] : memref<288x512xf32, #tpu.memory_space<vmem>>, vector<32x256xf32>
    tpu.vector_store %arg7[%c96, %c0_47], %51 {strides = array<i32>} : memref<288x512xf32, #tpu.memory_space<vmem>>, vector<32x256xf32>,
    %c0_48 = arith.constant 0 : index
    %c0_49 = arith.constant 0 : index
    %c128_50 = arith.constant 128 : index
    %53 = vector.load %arg6[%c0_48, %c0_49, %c128_50] : memref<2x32x512xf32, #tpu.memory_space<vmem>>, vector<1x32x256xf32>
    %54 = vector.shape_cast %53 : vector<1x32x256xf32> to vector<32x256xf32>
    %c128_51 = arith.constant 128 : index
    %c0_52 = arith.constant 0 : index
    %55 = vector.load %arg7[%c128_51, %c0_52] : memref<288x512xf32, #tpu.memory_space<vmem>>, vector<32x256xf32>
    tpu.vector_store %arg7[%c128_51, %c0_52], %54 {strides = array<i32>} : memref<288x512xf32, #tpu.memory_space<vmem>>, vector<32x256xf32>,
    %c0_53 = arith.constant 0 : index
    %c0_54 = arith.constant 0 : index
    %c129 = arith.constant 129 : index
    %56 = vector.load %arg6[%c0_53, %c0_54, %c129] : memref<2x32x512xf32, #tpu.memory_space<vmem>>, vector<1x32x256xf32>
    %57 = vector.shape_cast %56 : vector<1x32x256xf32> to vector<32x256xf32>
    %58 = vector.broadcast %2 : vector<1x256xf32> to vector<32x256xf32>
    %59 = arith.mulf %57, %58 : vector<32x256xf32>
    %c160 = arith.constant 160 : index
    %c0_55 = arith.constant 0 : index
    %60 = vector.load %arg7[%c160, %c0_55] : memref<288x512xf32, #tpu.memory_space<vmem>>, vector<32x256xf32>
    tpu.vector_store %arg7[%c160, %c0_55], %59 {strides = array<i32>} : memref<288x512xf32, #tpu.memory_space<vmem>>, vector<32x256xf32>,
    %c0_56 = arith.constant 0 : index
    %c0_57 = arith.constant 0 : index
    %c143 = arith.constant 143 : index
    %61 = vector.load %arg6[%c0_56, %c0_57, %c143] : memref<2x32x512xf32, #tpu.memory_space<vmem>>, vector<1x32x256xf32>
    %62 = vector.shape_cast %61 : vector<1x32x256xf32> to vector<32x256xf32>
    %63 = vector.broadcast %1 : vector<1x256xf32> to vector<32x256xf32>
    %64 = arith.mulf %62, %63 : vector<32x256xf32>
    %c192 = arith.constant 192 : index
    %c0_58 = arith.constant 0 : index
    %65 = vector.load %arg7[%c192, %c0_58] : memref<288x512xf32, #tpu.memory_space<vmem>>, vector<32x256xf32>
    tpu.vector_store %arg7[%c192, %c0_58], %64 {strides = array<i32>} : memref<288x512xf32, #tpu.memory_space<vmem>>, vector<32x256xf32>,
    %c0_59 = arith.constant 0 : index
    %c0_60 = arith.constant 0 : index
    %c144 = arith.constant 144 : index
    %66 = vector.load %arg6[%c0_59, %c0_60, %c144] : memref<2x32x512xf32, #tpu.memory_space<vmem>>, vector<1x32x256xf32>
    %67 = vector.shape_cast %66 : vector<1x32x256xf32> to vector<32x256xf32>
    %c224 = arith.constant 224 : index
    %c0_61 = arith.constant 0 : index
    %68 = vector.load %arg7[%c224, %c0_61] : memref<288x512xf32, #tpu.memory_space<vmem>>, vector<32x256xf32>
    tpu.vector_store %arg7[%c224, %c0_61], %67 {strides = array<i32>} : memref<288x512xf32, #tpu.memory_space<vmem>>, vector<32x256xf32>,
    %c0_62 = arith.constant 0 : index
    %c0_63 = arith.constant 0 : index
    %c145 = arith.constant 145 : index
    %69 = vector.load %arg6[%c0_62, %c0_63, %c145] : memref<2x32x512xf32, #tpu.memory_space<vmem>>, vector<1x32x256xf32>
    %70 = vector.shape_cast %69 : vector<1x32x256xf32> to vector<32x256xf32>
    %71 = vector.broadcast %2 : vector<1x256xf32> to vector<32x256xf32>
    %72 = arith.mulf %70, %71 : vector<32x256xf32>
    %c256 = arith.constant 256 : index
    %c0_64 = arith.constant 0 : index
    %73 = vector.load %arg7[%c256, %c0_64] : memref<288x512xf32, #tpu.memory_space<vmem>>, vector<32x256xf32>
    tpu.vector_store %arg7[%c256, %c0_64], %72 {strides = array<i32>} : memref<288x512xf32, #tpu.memory_space<vmem>>, vector<32x256xf32>,
    %c1_65 = arith.constant 1 : index
    %c0_66 = arith.constant 0 : index
    %c111_67 = arith.constant 111 : index
    %74 = vector.load %arg6[%c1_65, %c0_66, %c111_67] : memref<2x32x512xf32, #tpu.memory_space<vmem>>, vector<1x32x256xf32>
    %75 = vector.shape_cast %74 : vector<1x32x256xf32> to vector<32x256xf32>
    %76 = vector.broadcast %1 : vector<1x256xf32> to vector<32x256xf32>
    %77 = arith.mulf %75, %76 : vector<32x256xf32>
    %c0_68 = arith.constant 0 : index
    %c256_69 = arith.constant 256 : index
    %78 = vector.load %arg7[%c0_68, %c256_69] : memref<288x512xf32, #tpu.memory_space<vmem>>, vector<32x256xf32>
    tpu.vector_store %arg7[%c0_68, %c256_69], %77 {strides = array<i32>} : memref<288x512xf32, #tpu.memory_space<vmem>>, vector<32x256xf32>,
    %c1_70 = arith.constant 1 : index
    %c0_71 = arith.constant 0 : index
    %c112_72 = arith.constant 112 : index
    %79 = vector.load %arg6[%c1_70, %c0_71, %c112_72] : memref<2x32x512xf32, #tpu.memory_space<vmem>>, vector<1x32x256xf32>
    %80 = vector.shape_cast %79 : vector<1x32x256xf32> to vector<32x256xf32>
    %c32_73 = arith.constant 32 : index
    %c256_74 = arith.constant 256 : index
    %81 = vector.load %arg7[%c32_73, %c256_74] : memref<288x512xf32, #tpu.memory_space<vmem>>, vector<32x256xf32>
    tpu.vector_store %arg7[%c32_73, %c256_74], %80 {strides = array<i32>} : memref<288x512xf32, #tpu.memory_space<vmem>>, vector<32x256xf32>,
    %c1_75 = arith.constant 1 : index
    %c0_76 = arith.constant 0 : index
    %c113_77 = arith.constant 113 : index
    %82 = vector.load %arg6[%c1_75, %c0_76, %c113_77] : memref<2x32x512xf32, #tpu.memory_space<vmem>>, vector<1x32x256xf32>
    %83 = vector.shape_cast %82 : vector<1x32x256xf32> to vector<32x256xf32>
    %84 = vector.broadcast %2 : vector<1x256xf32> to vector<32x256xf32>
    %85 = arith.mulf %83, %84 : vector<32x256xf32>
    %c64_78 = arith.constant 64 : index
    %c256_79 = arith.constant 256 : index
    %86 = vector.load %arg7[%c64_78, %c256_79] : memref<288x512xf32, #tpu.memory_space<vmem>>, vector<32x256xf32>
    tpu.vector_store %arg7[%c64_78, %c256_79], %85 {strides = array<i32>} : memref<288x512xf32, #tpu.memory_space<vmem>>, vector<32x256xf32>,
    %c1_80 = arith.constant 1 : index
    %c0_81 = arith.constant 0 : index
    %c127_82 = arith.constant 127 : index
    %87 = vector.load %arg6[%c1_80, %c0_81, %c127_82] : memref<2x32x512xf32, #tpu.memory_space<vmem>>, vector<1x32x256xf32>
    %88 = vector.shape_cast %87 : vector<1x32x256xf32> to vector<32x256xf32>
    %89 = vector.broadcast %1 : vector<1x256xf32> to vector<32x256xf32>
    %90 = arith.mulf %88, %89 : vector<32x256xf32>
    %c96_83 = arith.constant 96 : index
    %c256_84 = arith.constant 256 : index
    %91 = vector.load %arg7[%c96_83, %c256_84] : memref<288x512xf32, #tpu.memory_space<vmem>>, vector<32x256xf32>
    tpu.vector_store %arg7[%c96_83, %c256_84], %90 {strides = array<i32>} : memref<288x512xf32, #tpu.memory_space<vmem>>, vector<32x256xf32>,
    %c1_85 = arith.constant 1 : index
    %c0_86 = arith.constant 0 : index
    %c128_87 = arith.constant 128 : index
    %92 = vector.load %arg6[%c1_85, %c0_86, %c128_87] : memref<2x32x512xf32, #tpu.memory_space<vmem>>, vector<1x32x256xf32>
    %93 = vector.shape_cast %92 : vector<1x32x256xf32> to vector<32x256xf32>
    %c128_88 = arith.constant 128 : index
    %c256_89 = arith.constant 256 : index
    %94 = vector.load %arg7[%c128_88, %c256_89] : memref<288x512xf32, #tpu.memory_space<vmem>>, vector<32x256xf32>
    tpu.vector_store %arg7[%c128_88, %c256_89], %93 {strides = array<i32>} : memref<288x512xf32, #tpu.memory_space<vmem>>, vector<32x256xf32>,
    %c1_90 = arith.constant 1 : index
    %c0_91 = arith.constant 0 : index
    %c129_92 = arith.constant 129 : index
    %95 = vector.load %arg6[%c1_90, %c0_91, %c129_92] : memref<2x32x512xf32, #tpu.memory_space<vmem>>, vector<1x32x256xf32>
    %96 = vector.shape_cast %95 : vector<1x32x256xf32> to vector<32x256xf32>
    %97 = vector.broadcast %2 : vector<1x256xf32> to vector<32x256xf32>
    %98 = arith.mulf %96, %97 : vector<32x256xf32>
    %c160_93 = arith.constant 160 : index
    %c256_94 = arith.constant 256 : index
    %99 = vector.load %arg7[%c160_93, %c256_94] : memref<288x512xf32, #tpu.memory_space<vmem>>, vector<32x256xf32>
    tpu.vector_store %arg7[%c160_93, %c256_94], %98 {strides = array<i32>} : memref<288x512xf32, #tpu.memory_space<vmem>>, vector<32x256xf32>,
    %c1_95 = arith.constant 1 : index
    %c0_96 = arith.constant 0 : index
    %c143_97 = arith.constant 143 : index
    %100 = vector.load %arg6[%c1_95, %c0_96, %c143_97] : memref<2x32x512xf32, #tpu.memory_space<vmem>>, vector<1x32x256xf32>
    %101 = vector.shape_cast %100 : vector<1x32x256xf32> to vector<32x256xf32>
    %102 = vector.broadcast %1 : vector<1x256xf32> to vector<32x256xf32>
    %103 = arith.mulf %101, %102 : vector<32x256xf32>
    %c192_98 = arith.constant 192 : index
    %c256_99 = arith.constant 256 : index
    %104 = vector.load %arg7[%c192_98, %c256_99] : memref<288x512xf32, #tpu.memory_space<vmem>>, vector<32x256xf32>
    tpu.vector_store %arg7[%c192_98, %c256_99], %103 {strides = array<i32>} : memref<288x512xf32, #tpu.memory_space<vmem>>, vector<32x256xf32>,
    %c1_100 = arith.constant 1 : index
    %c0_101 = arith.constant 0 : index
    %c144_102 = arith.constant 144 : index
    %105 = vector.load %arg6[%c1_100, %c0_101, %c144_102] : memref<2x32x512xf32, #tpu.memory_space<vmem>>, vector<1x32x256xf32>
    %106 = vector.shape_cast %105 : vector<1x32x256xf32> to vector<32x256xf32>
    %c224_103 = arith.constant 224 : index
    %c256_104 = arith.constant 256 : index
    %107 = vector.load %arg7[%c224_103, %c256_104] : memref<288x512xf32, #tpu.memory_space<vmem>>, vector<32x256xf32>
    tpu.vector_store %arg7[%c224_103, %c256_104], %106 {strides = array<i32>} : memref<288x512xf32, #tpu.memory_space<vmem>>, vector<32x256xf32>,
    %c1_105 = arith.constant 1 : index
    %c0_106 = arith.constant 0 : index
    %c145_107 = arith.constant 145 : index
    %108 = vector.load %arg6[%c1_105, %c0_106, %c145_107] : memref<2x32x512xf32, #tpu.memory_space<vmem>>, vector<1x32x256xf32>
    %109 = vector.shape_cast %108 : vector<1x32x256xf32> to vector<32x256xf32>
    %110 = vector.broadcast %2 : vector<1x256xf32> to vector<32x256xf32>
    %111 = arith.mulf %109, %110 : vector<32x256xf32>
    %c256_108 = arith.constant 256 : index
    %c256_109 = arith.constant 256 : index
    %112 = vector.load %arg7[%c256_108, %c256_109] : memref<288x512xf32, #tpu.memory_space<vmem>>, vector<32x256xf32>
    tpu.vector_store %arg7[%c256_108, %c256_109], %111 {strides = array<i32>} : memref<288x512xf32, #tpu.memory_space<vmem>>, vector<32x256xf32>,
    %c0_110 = arith.constant 0 : index
    %c0_111 = arith.constant 0 : index
    %113 = vector.load %arg3[%c0_110, %c0_111] : memref<32x288xf32, #tpu.memory_space<vmem>>, vector<32x288xf32>
    %c0_112 = arith.constant 0 : index
    %c0_113 = arith.constant 0 : index
    %114 = vector.load %arg7[%c0_112, %c0_113] : memref<288x512xf32, #tpu.memory_space<vmem>>, vector<288x512xf32>
    %cst_114 = arith.constant dense<0.000000e+00> : vector<32x512xf32>
    %115 = tpu.matmul %113, %114, %cst_114 {dimension_numbers = #tpu.dot_dimension_numbers<[1], [0], [0], [1], [0, 0, 1, 1], [], []>} : vector<32x288xf32>, vector<288x512xf32>, vector<32x512xf32> -> vector<32x512xf32>
    %116 = vector.extract_strided_slice %115 {offsets = [0, 0], sizes = [32, 256], strides = [1, 1]} : vector<32x512xf32> to vector<32x256xf32>
    %cst_115 = arith.constant dense<0.000000e+00> : vector<32xf32>
    %117 = vector.multi_reduction <add>, %116, %cst_115 [1] : vector<32x256xf32> to vector<32xf32>
    %118 = vector.shape_cast %117 : vector<32xf32> to vector<32x1xf32>
    %cst_116 = arith.constant 3.906250e-03 : f32
    %119 = vector.broadcast %cst_116 : f32 to vector<32x1xf32>
    %120 = arith.mulf %118, %119 : vector<32x1xf32>
    %121 = vector.broadcast %120 : vector<32x1xf32> to vector<32x256xf32>
    %122 = arith.subf %116, %121 : vector<32x256xf32>
    %123 = arith.mulf %122, %122 : vector<32x256xf32>
    %cst_117 = arith.constant dense<0.000000e+00> : vector<32xf32>
    %124 = vector.multi_reduction <add>, %123, %cst_117 [1] : vector<32x256xf32> to vector<32xf32>
    %125 = vector.shape_cast %124 : vector<32xf32> to vector<32x1xf32>
    %cst_118 = arith.constant 3.906250e-03 : f32
    %126 = vector.broadcast %cst_118 : f32 to vector<32x1xf32>
    %127 = arith.mulf %125, %126 : vector<32x1xf32>
    %cst_119 = arith.constant 9.99999974E-6 : f32
    %128 = vector.broadcast %cst_119 : f32 to vector<32x1xf32>
    %129 = arith.addf %127, %128 : vector<32x1xf32>
    %130 = math.rsqrt %129 : vector<32x1xf32>
    %131 = vector.broadcast %130 : vector<32x1xf32> to vector<32x256xf32>
    %132 = arith.mulf %122, %131 : vector<32x256xf32>
    %cst_120 = arith.constant 0.000000e+00 : f32
    %133 = vector.broadcast %cst_120 : f32 to vector<32x256xf32>
    %134 = arith.cmpf oge, %132, %133 : vector<32x256xf32>
    %cst_121 = arith.constant 1.000000e-01 : f32
    %135 = vector.broadcast %cst_121 : f32 to vector<32x256xf32>
    %136 = arith.mulf %135, %132 : vector<32x256xf32>
    %137 = arith.select %134, %132, %136 : vector<32x256xi1>, vector<32x256xf32>
    %c0_122 = arith.constant 0 : index
    %c0_123 = arith.constant 0 : index
    %c0_124 = arith.constant 0 : index
    %138 = vector.load %arg5[%c0_122, %c0_123, %c0_124] : memref<2x32x256xf32, #tpu.memory_space<vmem>>, vector<1x32x256xf32>
    %139 = vector.shape_cast %138 : vector<1x32x256xf32> to vector<32x256xf32>
    %140 = vector.shape_cast %137 : vector<32x256xf32> to vector<1x32x256xf32>
    tpu.vector_store %arg5[%c0_122, %c0_123, %c0_124], %140 {strides = array<i32>} : memref<2x32x256xf32, #tpu.memory_space<vmem>>, vector<1x32x256xf32>,
    %141 = vector.extract_strided_slice %115 {offsets = [0, 256], sizes = [32, 256], strides = [1, 1]} : vector<32x512xf32> to vector<32x256xf32>
    %cst_125 = arith.constant dense<0.000000e+00> : vector<32xf32>
    %142 = vector.multi_reduction <add>, %141, %cst_125 [1] : vector<32x256xf32> to vector<32xf32>
    %143 = vector.shape_cast %142 : vector<32xf32> to vector<32x1xf32>
    %cst_126 = arith.constant 3.906250e-03 : f32
    %144 = vector.broadcast %cst_126 : f32 to vector<32x1xf32>
    %145 = arith.mulf %143, %144 : vector<32x1xf32>
    %146 = vector.broadcast %145 : vector<32x1xf32> to vector<32x256xf32>
    %147 = arith.subf %141, %146 : vector<32x256xf32>
    %148 = arith.mulf %147, %147 : vector<32x256xf32>
    %cst_127 = arith.constant dense<0.000000e+00> : vector<32xf32>
    %149 = vector.multi_reduction <add>, %148, %cst_127 [1] : vector<32x256xf32> to vector<32xf32>
    %150 = vector.shape_cast %149 : vector<32xf32> to vector<32x1xf32>
    %cst_128 = arith.constant 3.906250e-03 : f32
    %151 = vector.broadcast %cst_128 : f32 to vector<32x1xf32>
    %152 = arith.mulf %150, %151 : vector<32x1xf32>
    %cst_129 = arith.constant 9.99999974E-6 : f32
    %153 = vector.broadcast %cst_129 : f32 to vector<32x1xf32>
    %154 = arith.addf %152, %153 : vector<32x1xf32>
    %155 = math.rsqrt %154 : vector<32x1xf32>
    %156 = vector.broadcast %155 : vector<32x1xf32> to vector<32x256xf32>
    %157 = arith.mulf %147, %156 : vector<32x256xf32>
    %cst_130 = arith.constant 0.000000e+00 : f32
    %158 = vector.broadcast %cst_130 : f32 to vector<32x256xf32>
    %159 = arith.cmpf oge, %157, %158 : vector<32x256xf32>
    %cst_131 = arith.constant 1.000000e-01 : f32
    %160 = vector.broadcast %cst_131 : f32 to vector<32x256xf32>
    %161 = arith.mulf %160, %157 : vector<32x256xf32>
    %162 = arith.select %159, %157, %161 : vector<32x256xi1>, vector<32x256xf32>
    %c1_132 = arith.constant 1 : index
    %c0_133 = arith.constant 0 : index
    %c0_134 = arith.constant 0 : index
    %163 = vector.load %arg5[%c1_132, %c0_133, %c0_134] : memref<2x32x256xf32, #tpu.memory_space<vmem>>, vector<1x32x256xf32>
    %164 = vector.shape_cast %163 : vector<1x32x256xf32> to vector<32x256xf32>
    %165 = vector.shape_cast %162 : vector<32x256xf32> to vector<1x32x256xf32>
    tpu.vector_store %arg5[%c1_132, %c0_133, %c0_134], %165 {strides = array<i32>} : memref<2x32x256xf32, #tpu.memory_space<vmem>>, vector<1x32x256xf32>,
    return
  }
  func.func @transform_0(%arg0: i32) -> (i32, i32, i32) {
    %c0_i32 = arith.constant 0 : i32
    %c0_i32_0 = arith.constant 0 : i32
    %c0_i32_1 = arith.constant 0 : i32
    return %arg0, %c0_i32, %c0_i32_0 : i32, i32, i32
  }
  func.func @transform_1(%arg0: i32) -> (i32, i32, i32) {
    %c0_i32 = arith.constant 0 : i32
    %c0_i32_0 = arith.constant 0 : i32
    %c0_i32_1 = arith.constant 0 : i32
    return %arg0, %c0_i32, %c0_i32_0 : i32, i32, i32
  }
  func.func @transform_2(%arg0: i32) -> (i32, i32) {
    %c0_i32 = arith.constant 0 : i32
    %c0_i32_0 = arith.constant 0 : i32
    %c0_i32_1 = arith.constant 0 : i32
    return %c0_i32, %c0_i32_0 : i32, i32
  }
  func.func @transform_3(%arg0: i32) -> (i32, i32) {
    %c0_i32 = arith.constant 0 : i32
    %c0_i32_0 = arith.constant 0 : i32
    %c0_i32_1 = arith.constant 0 : i32
    return %c0_i32, %c0_i32_0 : i32, i32
  }
  func.func @transform_4(%arg0: i32) -> (i32, i32, i32) {
    %c0_i32 = arith.constant 0 : i32
    %c0_i32_0 = arith.constant 0 : i32
    %c0_i32_1 = arith.constant 0 : i32
    return %arg0, %c0_i32, %c0_i32_0 : i32, i32, i32
  }
}

</mosaic_0001>

<bundles_post_ra>
// kernel: cfm_forward.1
= control target key start
LH: loop header
LB: loop body
LE: loop exit
PB: predicated region body
PF: predicated region fallthrough
CT: control target
= control target key end

     0   :  { %v84_v0 = vlaneseq  ;;  %s2901_s19 = smov 111   ;;  %s2902_s20 = smov 113   ;;  %v3928_v22 = vmov 0.0   ;;  %vm96_vm0 = vcmask 908288   ;;  %vm272_vm1 = vcmask 924672   ;;  %s3923_s3 = inlined_call_operand.vmem [shape: f32[2,256], index: 3, kind: input, shape index: {}]   ;;  %s3924_s0 = inlined_call_operand.vmem [shape: f32[2,8,256], index: 0, kind: input, shape index: {}]   ;;  %s3925_s1 = inlined_call_operand.vmem [shape: f32[2,24,256], index: 1, kind: input, shape index: {}]   ;;  %s3926_s2 = inlined_call_operand.vmem [shape: f32[32,288], index: 2, kind: input, shape index: {}]   ;;  %s3927_s4 = inlined_call_operand.vmem [shape: f32[2,32,256], index: 4, kind: output, shape index: {}]  }
   0x1   :  { %v17_v2 = vld [vmem:[%s3923_s3] ss:$2 sm:$0x3]  ;;  %v2195_v3 = vld [vmem:[%s3923_s3 + $0x1] ss:$2 sm:$0x3] }
   0x2   :  { %v85_v1 = vshrl.u32 %v84_v0, 7  ;;  %s2903_s21 = smov 127   ;;  %s2904_s3 = smov 1   ;;  %v2952_v10 = vld [vmem:[%s3924_s0] sm:$0xff]  ;;  %v2957_v11 = vld [vmem:[%s3924_s0 + $0x8] sm:$0xff]  ;;  %v2978_v16 = vld [vmem:[%s3924_s0 + $0x10] sm:$0xff] }
   0x3   :  { %v2962_v12 = vld [vmem:[%s3925_s1] sm:$0xff]  ;;  %v2967_v13 = vld [vmem:[%s3925_s1 + $0x8] sm:$0xff]  ;;  %s2905_s30 = smov 15   ;;  %v2389_v14 = vpack.i.bf16 %v2957_v11, %v2952_v10  ;;  %v2983_v17 = vld [vmem:[%s3924_s0 + $0x18] sm:$0xff]  ;;  %s2906_s13 = smov 16   ;;  %vm366_vm2 = vcmask 1039360  }
   0x4   :  { %v86_v4 = vsub.s32 0, %v85_v1  ;;  %v90_v5 = vsub.s32 1, %v85_v1  ;;  %v2394_v15 = vpack.i.bf16 %v2967_v13, %v2962_v12  ;;  %v2988_v18 = vld [vmem:[%s3925_s1 + $0x30] sm:$0xff]  ;;  %v2993_v19 = vld [vmem:[%s3925_s1 + $0x38] sm:$0xff]  ;;  %v2399_v20 = vpack.i.bf16 %v2983_v17, %v2978_v16  ;;  %v3014_v25 = vld [vmem:[%s3925_s1 + $0x20] sm:$0xff]  ;;  %s2908_s25 = smov 17  }
   0x5   :  { %v2404_v21 = vpack.i.bf16 %v2993_v19, %v2988_v18  ;;  %v3004_v23 = vld [vmem:[%s3925_s1 + $0x10] sm:$0xff]  ;;  %v3009_v24 = vld [vmem:[%s3925_s1 + $0x18] sm:$0xff]  ;;  %v3019_v26 = vld [vmem:[%s3925_s1 + $0x28] sm:$0xff]  ;;  %vm419_vm3 = vcmask 7168   ;;  %vm325_vm4 = vcmask 121856   ;;  %vm149_vm5 = vcmask 138240  }
   0x6   :  { %v87_v6 = vrot.slane %v17_v2, %v86_v4  ;;  %v263_v7 = vrot.slane %v2195_v3, %v86_v4  ;;  %v91_v8 = vrot.slane %v17_v2, %v90_v5  ;;  %v267_v9 = vrot.slane %v2195_v3, %v90_v5  ;;  %v3030_v29 = vld [vmem:[%s3925_s1 + $0x40] sm:$0xff]  ;;  %v3035_v30 = vld [vmem:[%s3925_s1 + $0x48] sm:$0xff]  ;;  %v3040_v31 = vld [vmem:[%s3925_s1 + $0x50] sm:$0xff] }
   0x7   :  { %v2419_v27 = vpack.i.bf16 %v3009_v24, %v3004_v23  ;;  %v2424_v28 = vpack.i.bf16 %v3019_v26, %v3014_v25  ;;  %v3045_v32 = vld [vmem:[%s3925_s1 + $0x58] sm:$0xff]  ;;  %v2429_v33 = vpack.i.bf16 %v3035_v30, %v3030_v29  ;;  %vm222_vm6 = vcmask 130048  }
   0x8   :  { %92 = vrot.lane.b32.xlu0 %v87_v6, %s2901_s19  ;;  %268 = vrot.lane.b32.xlu1 %v263_v7, %s2902_s20  ;;  %v2434_v34 = vpack.i.bf16 %v3045_v32, %v3040_v31  ;;  %vm692_vm7 = vcmask 916480   ;;  %vm1629_vm8 = vcmask 261120  }
   0xc   :  { %94 = vrot.lane.b32.xlu0 %v91_v8, %s2901_s19  ;;  %270 = vrot.lane.b32.xlu1 %v267_v9, %s2902_s20 }
  0x10   :  { %364 = vrot.lane.b32.xlu1 %v91_v8, %s2903_s21  ;;  %362 = vrot.lane.b32.xlu0 %v87_v6, %s2903_s21 }
  0x14   :  { %474 = vrot.lane.b32.xlu1 %v267_v9, %s2904_s3  ;;  %472 = vrot.lane.b32.xlu0 %v263_v7, %s2904_s3 }
  0x18   :  { %564 = vrot.lane.b32.xlu0 %v87_v6, %s2905_s30  ;;  %566 = vrot.lane.b32.xlu1 %v91_v8, %s2905_s30 }
  0x1c   :  { %2390 = vrot.lane.b32.xlu0 %v2389_v14, %s2906_s13  ;;  %2395 = vrot.lane.b32.xlu1 %v2394_v15, %s2906_s13 }
  0x20   :  { %2400 = vrot.lane.b32.xlu0 %v2399_v20, %s2906_s13  ;;  %2405 = vrot.lane.b32.xlu1 %v2404_v21, %s2906_s13 }
  0x24   :  { %2410 = vrot.lane.b32.xlu0 %v3928_v22, %s2906_s13  ;;  %2415 = vrot.lane.b32.xlu1 %v3928_v22, %s2906_s13 }
  0x28   :  { %729 = vrot.lane.b32.xlu0 %v263_v7, %s2908_s25  ;;  %731 = vrot.lane.b32.xlu1 %v267_v9, %s2908_s25 }
  0x2c   :  { %2420 = vrot.lane.b32.xlu0 %v2419_v27, %s2906_s13  ;;  %2425 = vrot.lane.b32.xlu1 %v2424_v28, %s2906_s13 }
  0x30   :  { %2430 = vrot.lane.b32.xlu0 %v2429_v33, %s2906_s13  ;;  %2435 = vrot.lane.b32.xlu1 %v2434_v34, %s2906_s13 }
  0x34   :  { %2440 = vrot.lane.b32.xlu0 %v3928_v22, %s2906_s13  ;;  %2445 = vrot.lane.b32.xlu1 %v3928_v22, %s2906_s13 }
  0x7a   :  { %v93_v35 = vpop.permute.xlu0 %92  ;;  %v269_v38 = vpop.permute.xlu1 %268 }
  0x7b   :  { %v101_v36 = vmul.f32 0.0, %v93_v35  ;;  %v277_v39 = vmul.f32 0.0, %v269_v38 }
  0x7d   :  { %v2454_v37 = vpack.i.bf16 %v101_v36, %v101_v36  ;;  %v2474_v41 = vpack.i.bf16 %v277_v39, %v277_v39 }
  0x7e   :  { %v95_v40 = vpop.permute.xlu0 %94  ;;  %v271_v62 = vpop.permute.xlu1 %270 }
  0x7f   :  { %2455 = vrot.lane.b32.xlu1 %v2454_v37, %s2908_s25  ;;  %2450 = vrot.lane.b32.xlu0 %v2454_v37, %s2908_s25  ;;  %v97_v45 = vsel %vm96_vm0, %v93_v35, %v95_v40  ;;  %v106_v46 = vmul.f32 %v95_v40, %v2967_v13  ;;  %v103_v47 = vmul.f32 %v95_v40, %v2957_v11 }
  0x80   :  { %v105_v48 = vmul.f32 %v97_v45, %v2962_v12  ;;  %v102_v49 = vmul.f32 %v97_v45, %v2952_v10  ;;  %v825_v50 = vmul.f32 %v2988_v18, %v97_v45  ;;  %v826_v51 = vmul.f32 %v2993_v19, %v95_v40 }
  0x81   :  { %v822_v54 = vmul.f32 %v2978_v16, %v97_v45  ;;  %v823_v55 = vmul.f32 %v2983_v17, %v95_v40  ;;  %v111_v56 = vmul.f32 %v97_v45, %v3014_v25  ;;  %v112_v57 = vmul.f32 %v95_v40, %v3019_v26 }
  0x82   :  { %v3057_v42 = vpop.permute.xlu0 %362  ;;  %v2514_v52 = vpack.i.bf16 %v106_v46, %v105_v48  ;;  %v2509_v53 = vpack.i.bf16 %v103_v47, %v102_v49  ;;  %v2524_v58 = vpack.i.bf16 %v826_v51, %v825_v50  ;;  %v108_v60 = vmul.f32 %v97_v45, %v3004_v23 }
  0x83   :  { %2465 = vrot.lane.b32.xlu1 %v2454_v37, %s2908_s25  ;;  %2460 = vrot.lane.b32.xlu0 %v2454_v37, %s2908_s25  ;;  %v371_v43 = vmul.f32 0.0, %v3057_v42  ;;  %v2519_v59 = vpack.i.bf16 %v823_v55, %v822_v54  ;;  %v109_v61 = vmul.f32 %v95_v40, %v3009_v24  ;;  %v2534_v63 = vpack.i.bf16 %v112_v57, %v111_v56  ;;  %v365_v37 = vpop.permute.xlu1 %364 }
  0x84   :  { %v831_v0 = vmul.f32 %v3040_v31, %v97_v45  ;;  %v832_v1 = vmul.f32 %v3045_v32, %v95_v40  ;;  %v828_v3 = vmul.f32 %v3030_v29, %v97_v45  ;;  %v829_v4 = vmul.f32 %v3035_v30, %v95_v40 }
  0x85   :  { %v2494_v44 = vpack.i.bf16 %v371_v43, %v371_v43  ;;  %v2529_v2 = vpack.i.bf16 %v109_v61, %v108_v60  ;;  %v273_v5 = vsel %vm272_vm1, %v269_v38, %v271_v62  ;;  %v282_v9 = vmul.f32 %v271_v62, %v2967_v13 }
  0x86   :  { %v2544_v6 = vpack.i.bf16 %v832_v1, %v831_v0  ;;  %v281_v7 = vmul.f32 %v273_v5, %v2962_v12  ;;  %v2539_v8 = vpack.i.bf16 %v829_v4, %v828_v3  ;;  %v278_v14 = vmul.f32 %v273_v5, %v2952_v10  ;;  %v473_v4 = vpop.permute.xlu0 %472 }
  0x87   :  { %2475 = vrot.lane.b32.xlu1 %v2474_v41, %s2905_s30  ;;  %2470 = vrot.lane.b32.xlu0 %v2474_v41, %s2905_s30  ;;  %v279_v15 = vmul.f32 %v271_v62, %v2957_v11  ;;  %v981_v20 = vmul.f32 %v2988_v18, %v273_v5  ;;  %v982_v21 = vmul.f32 %v2993_v19, %v271_v62  ;;  %v475_v3 = vpop.permute.xlu1 %474 }
  0x88   :  { %v2554_v27 = vpack.i.bf16 %v282_v9, %v281_v7  ;;  %v978_v33 = vmul.f32 %v2978_v16, %v273_v5  ;;  %v979_v34 = vmul.f32 %v2983_v17, %v271_v62  ;;  %v287_v35 = vmul.f32 %v273_v5, %v3014_v25 }
  0x89   :  { %v2549_v28 = vpack.i.bf16 %v279_v15, %v278_v14  ;;  %v288_v36 = vmul.f32 %v271_v62, %v3019_v26  ;;  %v2564_v38 = vpack.i.bf16 %v982_v21, %v981_v20  ;;  %v284_v40 = vmul.f32 %v273_v5, %v3004_v23 }
  0x8a   :  { %v2559_v39 = vpack.i.bf16 %v979_v34, %v978_v33  ;;  %v367_v43 = vsel %vm366_vm2, %v3057_v42, %v365_v37  ;;  %v987_v45 = vmul.f32 %v3040_v31, %v273_v5  ;;  %v988_v47 = vmul.f32 %v3045_v32, %v271_v62 }
  0x8b   :  { %2485 = vrot.lane.b32.xlu1 %v2474_v41, %s2905_s30  ;;  %2480 = vrot.lane.b32.xlu0 %v2474_v41, %s2905_s30  ;;  %v285_v41 = vmul.f32 %v271_v62, %v3009_v24  ;;  %v984_v48 = vmul.f32 %v3030_v29, %v273_v5  ;;  %v985_v49 = vmul.f32 %v3035_v30, %v271_v62  ;;  %v482_v20 = vmul.f32 0.0, %v475_v3 }
  0x8c   :  { %v375_v50 = vmul.f32 %v367_v43, %v2962_v12  ;;  %v376_v51 = vmul.f32 %v365_v37, %v2967_v13  ;;  %v373_v54 = vmul.f32 %v365_v37, %v2957_v11  ;;  %v1065_v56 = vmul.f32 %v2988_v18, %v367_v43 }
  0x8d   :  { %v2569_v46 = vpack.i.bf16 %v285_v41, %v284_v40  ;;  %v2579_v42 = vpack.i.bf16 %v985_v49, %v984_v48  ;;  %v1063_v60 = vmul.f32 %v2983_v17, %v365_v37  ;;  %v381_v61 = vmul.f32 %v367_v43, %v3014_v25 }
  0x8e   :  { %v2594_v55 = vpack.i.bf16 %v376_v51, %v375_v50  ;;  %v382_v62 = vmul.f32 %v365_v37, %v3019_v26  ;;  %v378_v1 = vmul.f32 %v367_v43, %v3004_v23  ;;  %v476_v7 = vsel %vm419_vm3, %v473_v4, %v475_v3 }
  0x8f   :  { %2495 = vrot.lane.b32.xlu1 %v2494_v44, %s2904_s3  ;;  %2490 = vrot.lane.b32.xlu0 %v2494_v44, %s2904_s3  ;;  %v1072_v9 = vmul.f32 %v3045_v32, %v365_v37  ;;  %v1068_v14 = vmul.f32 %v3030_v29, %v367_v43  ;;  %v1069_v15 = vmul.f32 %v3035_v30, %v365_v37 }
  0x90   :  { %v2614_v5 = vpack.i.bf16 %v382_v62, %v381_v61  ;;  %v484_v21 = vmul.f32 %v476_v7, %v2967_v13  ;;  %v1161_v41 = vmul.f32 %v2978_v16, %v473_v4  ;;  %v490_v51 = vmul.f32 %v476_v7, %v3019_v26 }
  0x91   :  { %v2619_v33 = vpack.i.bf16 %v1069_v15, %v1068_v14 }
  0x92   :  { %v2634_v34 = vpack.i.bf16 %v482_v20, %v484_v21 }
  0x93   :  { %2505 = vrot.lane.b32.xlu1 %v2494_v44, %s2904_s3  ;;  %2500 = vrot.lane.b32.xlu0 %v2494_v44, %s2904_s3  ;;  %v2574_v44 = vpack.i.bf16 %v288_v36, %v287_v35  ;;  %v3147_v36 = vpop.permute.xlu0 %564 }
  0x97   :  { %2515 = vrot.lane.b32.xlu1 %v2514_v52, %s2908_s25  ;;  %2510 = vrot.lane.b32.xlu0 %v2509_v53, %s2908_s25  ;;  %v2584_v52 = vpack.i.bf16 %v988_v47, %v987_v45  ;;  %v372_v53 = vmul.f32 %v367_v43, %v2952_v10  ;;  %v1164_v45 = vmul.f32 %v2988_v18, %v473_v4 }
  0x98   :  { %v483_v47 = vmul.f32 %v473_v4, %v2962_v12 }
  0x99   :  { %v2589_v57 = vpack.i.bf16 %v373_v54, %v372_v53  ;;  %v2654_v49 = vpack.i.bf16 %v1164_v45, %v1161_v41  ;;  %v1171_v54 = vmul.f32 %v3045_v32, %v476_v7 }
  0x9b   :  { %2525 = vrot.lane.b32.xlu1 %v2524_v58, %s2908_s25  ;;  %2520 = vrot.lane.b32.xlu0 %v2519_v59, %s2908_s25  ;;  %v1066_v58 = vmul.f32 %v2993_v19, %v365_v37  ;;  %v1062_v59 = vmul.f32 %v2978_v16, %v367_v43 }
  0x9d   :  { %v2599_v0 = vpack.i.bf16 %v1063_v60, %v1062_v59  ;;  %v1167_v59 = vmul.f32 %v3030_v29, %v473_v4 }
  0x9f   :  { %2535 = vrot.lane.b32.xlu1 %v2534_v63, %s2908_s25  ;;  %2530 = vrot.lane.b32.xlu0 %v2529_v2, %s2908_s25  ;;  %v2604_v63 = vpack.i.bf16 %v1066_v58, %v1065_v56  ;;  %v379_v2 = vmul.f32 %v365_v37, %v3009_v24  ;;  %v567_v37 = vpop.permute.xlu1 %566  ;;  %v2674_v58 = vpack.i.bf16 %v482_v20, %v1171_v54 }
  0xa0   :  { %v574_v3 = vmul.f32 0.0, %v567_v37  ;;  %v1251_v54 = vmul.f32 %v3030_v29, %v3147_v36 }
  0xa3   :  { %2545 = vrot.lane.b32.xlu1 %v2544_v6, %s2908_s25  ;;  %2540 = vrot.lane.b32.xlu0 %v2539_v8, %s2908_s25  ;;  %v1071_v6 = vmul.f32 %v3040_v31, %v367_v43  ;;  %v2609_v8 = vpack.i.bf16 %v379_v2, %v378_v1  ;;  %v3159_v48 = vpop.permute.xlu1 %2395  ;;  %v489_v1 = vmul.f32 %v473_v4, %v3014_v25 }
  0xa4   :  { %v568_v2 = vsel %vm325_vm4, %v3147_v36, %v567_v37 }
  0xa5   :  { %v1246_v21 = vmul.f32 %v2983_v17, %v568_v2  ;;  %v579_v45 = vmul.f32 %v568_v2, %v3009_v24 }
  0xa7   :  { %2555 = vrot.lane.b32.xlu1 %v2554_v27, %s2905_s30  ;;  %2550 = vrot.lane.b32.xlu0 %v2549_v28, %s2905_s30  ;;  %v481_v27 = vmul.f32 %v476_v7, %v2957_v11  ;;  %v2624_v28 = vpack.i.bf16 %v1072_v9, %v1071_v6  ;;  %v3169_v53 = vpop.permute.xlu1 %2405  ;;  %v2699_v37 = vpack.i.bf16 %v574_v3, %v1246_v21 }
  0xa9   :  { %v2629_v35 = vpack.i.bf16 %v482_v20, %v481_v27  ;;  %v1245_v27 = vmul.f32 %v2978_v16, %v3147_v36 }
  0xab   :  { %2565 = vrot.lane.b32.xlu1 %v2564_v38, %s2905_s30  ;;  %2560 = vrot.lane.b32.xlu0 %v2559_v39, %s2905_s30  ;;  %v1165_v38 = vmul.f32 %v2993_v19, %v476_v7  ;;  %v1162_v39 = vmul.f32 %v2983_v17, %v476_v7  ;;  %v3178_v62 = vpop.permute.xlu1 %2415 }
  0xad   :  { %v2649_v40 = vpack.i.bf16 %v482_v20, %v1165_v38  ;;  %v2639_v43 = vpack.i.bf16 %v482_v20, %v1162_v39  ;;  %v572_v38 = vmul.f32 %v3147_v36, %v2952_v10  ;;  %v575_v39 = vmul.f32 %v3147_v36, %v2962_v12 }
  0xaf   :  { %2575 = vrot.lane.b32.xlu1 %v2574_v44, %s2905_s30  ;;  %2570 = vrot.lane.b32.xlu0 %v2569_v46, %s2905_s30  ;;  %v3154_v44 = vpop.permute.xlu0 %2390  ;;  %v480_v46 = vmul.f32 %v473_v4, %v2952_v10  ;;  %v2709_v41 = vpack.i.bf16 %v575_v39, %v572_v38  ;;  %v2769_v38 = vpack.i.bf16 %v2962_v12, %v2952_v10 }
  0xb0   :  { %v2393_v21 = vunpack.i.h.bf16 %v3154_v44 }
  0xb1   :  { %v2644_v50 = vpack.i.bf16 %v483_v47, %v480_v46 }
  0xb3   :  { %2585 = vrot.lane.b32.xlu1 %v2584_v52, %s2905_s30  ;;  %2580 = vrot.lane.b32.xlu0 %v2579_v42, %s2905_s30  ;;  %v487_v52 = vmul.f32 %v476_v7, %v3009_v24  ;;  %v3167_v42 = vpop.permute.xlu0 %2400 }
  0xb4   :  { %v2403_v39 = vunpack.i.h.bf16 %v3167_v42 }
  0xb5   :  { %v2659_v56 = vpack.i.bf16 %v482_v20, %v487_v52  ;;  %v1252_v52 = vmul.f32 %v3035_v30, %v568_v2 }
  0xb7   :  { %2595 = vrot.lane.b32.xlu1 %v2594_v55, %s2904_s3  ;;  %2590 = vrot.lane.b32.xlu0 %v2589_v57, %s2904_s3  ;;  %v2664_v55 = vpack.i.bf16 %v482_v20, %v490_v51  ;;  %v1168_v57 = vmul.f32 %v3035_v30, %v476_v7  ;;  %v3176_v60 = vpop.permute.xlu0 %2410  ;;  %v576_v7 = vmul.f32 %v568_v2, %v2967_v13 }
  0xb8   :  { %v1255_v51 = vmul.f32 %v3045_v32, %v568_v2 }
  0xb9   :  { %v2669_v61 = vpack.i.bf16 %v482_v20, %v1168_v57  ;;  %v2694_v14 = vpack.i.bf16 %v574_v3, %v576_v7  ;;  %v1249_v20 = vmul.f32 %v2993_v19, %v568_v2 }
  0xbb   :  { %2605 = vrot.lane.b32.xlu1 %v2604_v63, %s2904_s3  ;;  %2600 = vrot.lane.b32.xlu0 %v2599_v0, %s2904_s3  ;;  %v1170_v63 = vmul.f32 %v3040_v31, %v473_v4  ;;  %v486_v0 = vmul.f32 %v473_v4, %v3004_v23  ;;  %v3189_v9 = vpop.permute.xlu0 %729  ;;  %v3193_v4 = vpop.permute.xlu1 %731 }
  0xbd   :  { %v2679_v6 = vpack.i.bf16 %v489_v1, %v486_v0 }
  0xbf   :  { %2615 = vrot.lane.b32.xlu1 %v2614_v5, %s2904_s3  ;;  %2610 = vrot.lane.b32.xlu0 %v2609_v8, %s2904_s3  ;;  %v2684_v5 = vpack.i.bf16 %v1170_v63, %v1167_v59  ;;  %v573_v8 = vmul.f32 %v568_v2, %v2957_v11  ;;  %v2729_v59 = vpack.i.bf16 %v574_v3, %v1252_v52 }
  0xc0   :  { %v581_v63 = vmul.f32 %v3147_v36, %v3014_v25 }
  0xc1   :  { %v2689_v15 = vpack.i.bf16 %v574_v3, %v573_v8  ;;  %v2764_v8 = vpack.i.bf16 %v3928_v22, %v2993_v19 }
  0xc3   :  { %2625 = vrot.lane.b32.xlu1 %v2624_v28, %s2904_s3  ;;  %2620 = vrot.lane.b32.xlu0 %v2619_v33, %s2904_s3  ;;  %v1248_v28 = vmul.f32 %v2988_v18, %v3147_v36  ;;  %v3203_v33 = vpop.permute.xlu0 %2420 }
  0xc7   :  { %2635 = vrot.lane.b32.xlu1 %v2634_v34, %s2903_s21  ;;  %2630 = vrot.lane.b32.xlu0 %v2629_v35, %s2903_s21  ;;  %v3205_v34 = vpop.permute.xlu1 %2425  ;;  %v2704_v35 = vpack.i.bf16 %v574_v3, %v1249_v20  ;;  %v3215_v46 = vpop.permute.xlu0 %2430 }
  0xcb   :  { %2650 = vrot.lane.b32.xlu1 %v2649_v40, %s2903_s21  ;;  %2640 = vrot.lane.b32.xlu0 %v2639_v43, %s2903_s21  ;;  %v2714_v40 = vpack.i.bf16 %v1248_v28, %v1245_v27  ;;  %v582_v43 = vmul.f32 %v568_v2, %v3019_v26  ;;  %v3217_v47 = vpop.permute.xlu1 %2435  ;;  %v2392_v27 = vunpack.i.l.bf16 %v3154_v44  ;;  %v2398_v28 = vunpack.i.h.bf16 %v3159_v48 }
  0xcc   :  { %v3930_v44 = vunpack.i.l.bf16 %v3167_v42 }
  0xcf   :  { %2655 = vrot.lane.b32.xlu1 %v2654_v49, %s2903_s21  ;;  %2645 = vrot.lane.b32.xlu0 %v2644_v50, %s2903_s21  ;;  %v2724_v49 = vpack.i.bf16 %v574_v3, %v582_v43  ;;  %v2719_v50 = vpack.i.bf16 %v574_v3, %v579_v45  ;;  %v3231_v57 = vpop.permute.xlu1 %2445  ;;  %v2412_v43 = vunpack.i.l.bf16 %v3176_v60  ;;  %v3339_v45 = vmul.f32 %v2988_v18, %v3189_v9 }
  0xd3   :  { %2665 = vrot.lane.b32.xlu1 %v2664_v55, %s2903_s21  ;;  %2660 = vrot.lane.b32.xlu0 %v2659_v56, %s2903_s21  ;;  %v1254_v55 = vmul.f32 %v3040_v31, %v3147_v36  ;;  %v3229_v56 = vpop.permute.xlu0 %2440 }
  0xd5   :  { %v2744_v2 = vpack.i.bf16 %v1254_v55, %v1251_v54  ;;  %v3291_v54 = vmul.f32 0.0, %v3193_v4  ;;  %v2423_v55 = vunpack.i.h.bf16 %v3203_v33 }
  0xd7   :  { %2675 = vrot.lane.b32.xlu1 %v2674_v58, %s2903_s21  ;;  %2670 = vrot.lane.b32.xlu0 %v2669_v61, %s2903_s21  ;;  %v2734_v58 = vpack.i.bf16 %v574_v3, %v1255_v51  ;;  %v578_v61 = vmul.f32 %v3147_v36, %v3004_v23  ;;  %v2754_v3 = vpack.i.bf16 %v3928_v22, %v2967_v13 }
  0xd8   :  { %v2749_v36 = vpack.i.bf16 %v3928_v22, %v2957_v11 }
  0xdb   :  { %2685 = vrot.lane.b32.xlu1 %v2684_v5, %s2903_s21  ;;  %2680 = vrot.lane.b32.xlu0 %v2679_v6, %s2903_s21  ;;  %v2739_v5 = vpack.i.bf16 %v581_v63, %v578_v61  ;;  %s2909_s21 = smov 112   ;;  %v2784_v61 = vpack.i.bf16 %v3928_v22, %v3019_v26  ;;  %v2779_v63 = vpack.i.bf16 %v3928_v22, %v3009_v24 }
  0xdf   :  { %2695 = vrot.lane.b32.xlu1 %v2694_v14, %s2902_s20  ;;  %2690 = vrot.lane.b32.xlu0 %v2689_v15, %s2902_s20  ;;  %v2759_v14 = vpack.i.bf16 %v3928_v22, %v2983_v17 }
  0xe3   :  { %2705 = vrot.lane.b32.xlu1 %v2704_v35, %s2902_s20  ;;  %2700 = vrot.lane.b32.xlu0 %v2699_v37, %s2902_s20  ;;  %v2397_v35 = vunpack.i.l.bf16 %v3159_v48  ;;  %v2774_v37 = vpack.i.bf16 %v2988_v18, %v2978_v16  ;;  %v2413_v48 = vunpack.i.h.bf16 %v3176_v60  ;;  %v2422_v60 = vunpack.i.l.bf16 %v3203_v33 }
  0xe7   :  { %2715 = vrot.lane.b32.xlu1 %v2714_v40, %s2902_s20  ;;  %2710 = vrot.lane.b32.xlu0 %v2709_v41, %s2902_s20  ;;  %v2408_v40 = vunpack.i.h.bf16 %v3169_v53  ;;  %v3389_v41 = vsel %vm222_vm6, %v2422_v60, %v2423_v55 }
  0xeb   :  { %2725 = vrot.lane.b32.xlu1 %v2724_v49, %s2902_s20  ;;  %2720 = vrot.lane.b32.xlu0 %v2719_v50, %s2902_s20  ;;  %v3283_v49 = vsel %vm149_vm5, %v3189_v9, %v3193_v4 }
  0xec   :  { %v3331_v4 = vmul.f32 %v2983_v17, %v3283_v49  ;;  %v3350_v17 = vmul.f32 %v3189_v9, %v2962_v12 }
  0xef   :  { %2735 = vrot.lane.b32.xlu1 %v2734_v58, %s2902_s20  ;;  %2730 = vrot.lane.b32.xlu0 %v2729_v59, %s2902_s20  ;;  %v2428_v58 = vunpack.i.h.bf16 %v3205_v34  ;;  %v3931_v59 = vunpack.i.l.bf16 %v3205_v34 }
  0xf1   :  { %v3239_v0 = vpop.permute.xlu1 %2455  ;;  %v3241_v1 = vpop.permute.xlu0 %2450 }
  0xf3   :  { %2745 = vrot.lane.b32.xlu1 %v2744_v2, %s2902_s20  ;;  %2740 = vrot.lane.b32.xlu0 %v2739_v5, %s2902_s20  ;;  %v2794_v5 = vpack.i.bf16 %v3928_v22, %v3045_v32  ;;  %v3325_v2 = vmul.f32 %v2993_v19, %v3283_v49  ;;  %v3346_v19 = vmul.f32 %v3189_v9, %v2952_v10 }
  0xf4   :  { %v3366_v10 = vmul.f32 %v3283_v49, %v3009_v24  ;;  %v3427_v24 = vmul.f32 %v3045_v32, %v3283_v49 }
  0xf5   :  { %v3249_v6 = vpop.permute.xlu1 %2465  ;;  %v3251_v7 = vpop.permute.xlu0 %2460 }
  0xf7   :  { %2755 = vrot.lane.b32.xlu1 %v2754_v3, %s2909_s21  ;;  %2750 = vrot.lane.b32.xlu0 %v2749_v36, %s2909_s21  ;;  %v3309_v3 = vmul.f32 %v3283_v49, %v2967_v13  ;;  %v2799_v13 = vpack.i.bf16 %v3014_v25, %v3004_v23 }
  0xf9   :  { %v3259_v15 = vpop.permute.xlu1 %2475  ;;  %v3261_v20 = vpop.permute.xlu0 %2470  ;;  %v2814_v18 = vpack.i.bf16 %v3291_v54, %v3309_v3 }
  0xfb   :  { %2765 = vrot.lane.b32.xlu1 %v2764_v8, %s2909_s21  ;;  %2760 = vrot.lane.b32.xlu0 %v2759_v14, %s2909_s21  ;;  %v2789_v14 = vpack.i.bf16 %v3928_v22, %v3035_v30  ;;  %v3335_v22 = vmul.f32 %v2978_v16, %v3189_v9  ;;  %v3354_v16 = vmul.f32 %v3283_v49, %v3019_v26 }
  0xfd   :  { %v3285_v50 = vpop.permute.xlu1 %2485  ;;  %v3287_v51 = vpop.permute.xlu0 %2480 }
  0xff   :  { %2775 = vrot.lane.b32.xlu1 %v2774_v37, %s2909_s21  ;;  %2770 = vrot.lane.b32.xlu0 %v2769_v38, %s2909_s21  ;;  %v2804_v37 = vpack.i.bf16 %v3040_v31, %v3030_v29  ;;  %v3321_v38 = vmul.f32 %v3283_v49, %v2957_v11  ;;  %v3359_v11 = vsel %vm222_vm6, %v2392_v27, %v2393_v21 }
 0x100   :  { %v3377_v21 = vsel %vm222_vm6, %v2412_v43, %v2392_v27  ;;  %v2442_v27 = vunpack.i.l.bf16 %v3229_v56  ;;  %v2453_v43 = vunpack.i.h.bf16 %v3241_v1 }
 0x101   :  { %v3311_v36 = vpop.permute.xlu1 %2495  ;;  %v3313_v8 = vpop.permute.xlu0 %2490  ;;  %v2809_v26 = vpack.i.bf16 %v3291_v54, %v3321_v38  ;;  %v3394_v38 = vsel %vm222_vm6, %v3931_v59, %v2428_v58 }
 0x102   :  { %v3441_v32 = vsel %vm222_vm6, %v2442_v27, %v2422_v60 }
 0x103   :  { %2785 = vrot.lane.b32.xlu1 %v2784_v61, %s2909_s21  ;;  %2780 = vrot.lane.b32.xlu0 %v2779_v63, %s2909_s21  ;;  %v3362_v61 = vsel %vm222_vm6, %v2397_v35, %v2398_v28  ;;  %v3380_v28 = vsel %vm222_vm6, %v2413_v48, %v2397_v35  ;;  %v2452_v35 = vunpack.i.l.bf16 %v3241_v1  ;;  %v2457_v1 = vunpack.i.l.bf16 %v3239_v0 }
 0x105   :  { %v3368_v63 = vpop.permute.xlu1 %2505  ;;  %v3370_v12 = vpop.permute.xlu0 %2500 }
 0x106   :  { %3934 = vst [vmem:[#allocation4_spill] sm:$0xff] %v3368_v63  ;;  %3935 = vst [vmem:[#allocation5_spill] sm:$0xff] %v3370_v12 }
 0x107   :  { %2795 = vrot.lane.b32.xlu1 %v2794_v5, %s2909_s21  ;;  %2790 = vrot.lane.b32.xlu0 %v2789_v14, %s2909_s21  ;;  %v3414_v5 = vsel %vm222_vm6, %v3930_v44, %v2403_v39  ;;  %v3936_v14 = vunpack.i.l.bf16 %v3169_v53 }
 0x109   :  { %v3419_v48 = vsel %vm222_vm6, %v3936_v14, %v2408_v40  ;;  %v2516_v55 = vpop.permute.xlu1 %2515  ;;  %v2511_v52 = vpop.permute.xlu0 %2510  ;;  %v2443_v40 = vunpack.i.h.bf16 %v3229_v56  ;;  %v3436_v14 = vmul.f32 %v3035_v30, %v3283_v49 }
 0x10a   :  { %v2518_v39 = vunpack.i.h.bf16 %v2516_v55  ;;  %v2517_v44 = vunpack.i.l.bf16 %v2516_v55  ;;  %v2513_v3 = vunpack.i.h.bf16 %v2511_v52  ;;  %v2512_v59 = vunpack.i.l.bf16 %v2511_v52 }
 0x10b   :  { %2805 = vrot.lane.b32.xlu1 %v2804_v37, %s2909_s21  ;;  %2800 = vrot.lane.b32.xlu0 %v2799_v13, %s2909_s21  ;;  %v2458_v55 = vunpack.i.h.bf16 %v3239_v0  ;;  %v2854_v0 = vpack.i.bf16 %v3291_v54, %v3427_v24  ;;  %v2483_v24 = vunpack.i.h.bf16 %v3287_v51 }
 0x10c   :  { %v151_v52 = vsel %vm149_vm5, %v2512_v59, %v2513_v3  ;;  %v153_v56 = vsel %vm149_vm5, %v2517_v44, %v2518_v39  ;;  %v150_v37 = vsel %vm149_vm5, %v2452_v35, %v2512_v59  ;;  %v152_v13 = vsel %vm149_vm5, %v2453_v43, %v2517_v44  ;;  %v1474_v3 = vld [vmem:[%s3926_s2 + $0x8] sm:$0xff] }
 0x10d   :  { %v2526_v58 = vpop.permute.xlu1 %2525  ;;  %v2521_v30 = vpop.permute.xlu0 %2520  ;;  %v2220_v49 = vpack.c.bf16 %v153_v56, %v151_v52  ;;  %v2222_v63 = vpack.c.bf16 %v152_v13, %v150_v37  ;;  %v2437_v59 = vunpack.i.l.bf16 %v3217_v47  ;;  %v2849_v44 = vpack.i.bf16 %v3291_v54, %v3436_v14  ;;  %1706 = vmatprep.mubr.f32.mxu0 %v1474_v3  ;;  %1884 = vmatprep.mubr.f32.mxu1 %v1474_v3 }
 0x10e   :  { %v2528_v33 = vunpack.i.h.bf16 %v2526_v58  ;;  %v2527_v12 = vunpack.i.l.bf16 %v2526_v58  ;;  %v2523_v60 = vunpack.i.h.bf16 %v2521_v30  ;;  %v2522_v27 = vunpack.i.l.bf16 %v2521_v30 }
 0x10f   :  { %2815 = vrot.lane.b32.xlu1 %v2814_v18, %s2901_s19  ;;  %2810 = vrot.lane.b32.xlu0 %v2809_v26, %s2901_s19  ;;  %v3937_v35 = vunpack.i.l.bf16 %v3205_v34  ;;  %v2463_v52 = vunpack.i.h.bf16 %v3251_v7  ;;  %v2462_v56 = vunpack.i.l.bf16 %v3251_v7  ;;  %v3939_v7 = vpack.i.bf16 %v3291_v54, %v3331_v4 }
 0x110   :  { %2221 = vmatprep.subr.bf16.mxu0 %v2220_v49  ;;  %v870_v58 = vsel %vm149_vm5, %v2522_v27, %v2523_v60  ;;  %v872_v39 = vsel %vm149_vm5, %v2527_v12, %v2528_v33  ;;  %v869_v18 = vsel %vm149_vm5, %v2457_v1, %v2522_v27  ;;  %v871_v26 = vsel %vm149_vm5, %v2458_v55, %v2527_v12 }
 0x111   :  { %v3462_v43 = vsel %vm222_vm6, %v2443_v40, %v3937_v35  ;;  %2223 = vmatpush1.bf16.msra.mxu0 %v2222_v63  ;;  %v2536_v37 = vpop.permute.xlu1 %2535  ;;  %v2531_v13 = vpop.permute.xlu0 %2530  ;;  %v2292_v34 = vpack.c.bf16 %v872_v39, %v870_v58  ;;  %v2294_v30 = vpack.c.bf16 %v871_v26, %v869_v18  ;;  %v2448_v33 = vunpack.i.h.bf16 %v3231_v57 }
 0x112   :  { %v2538_v40 = vunpack.i.h.bf16 %v2536_v37  ;;  %v2537_v49 = vunpack.i.l.bf16 %v2536_v37  ;;  %v2533_v35 = vunpack.i.h.bf16 %v2531_v13  ;;  %v2532_v60 = vunpack.i.l.bf16 %v2531_v13 }
 0x113   :  { %v3938_v12 = vpack.i.bf16 %v3291_v54, %v3325_v2  ;;  %2820 = vrot.lane.b32.xlu0 %v3939_v7, %s2901_s19  ;;  %v2234_v63 = vpack.c.bf16 %v3462_v43, %v3441_v32  ;;  %v3940_v1 = vunpack.i.l.bf16 %v3167_v42  ;;  %v3941_v55 = vunpack.i.l.bf16 %v3178_v62  ;;  %2293 = vmatprep.subr.bf16.mxu1 %v2292_v34 }
 0x114   :  { %v3942_v3 = vunpack.i.l.bf16 %v3169_v53  ;;  %v3943_v2 = vunpack.i.h.bf16 %v3178_v62  ;;  %v155_v4 = vsel %vm149_vm5, %v2532_v60, %v2533_v35  ;;  %v157_v39 = vsel %vm149_vm5, %v2537_v49, %v2538_v40  ;;  %2295 = vmatpush1.bf16.msra.mxu1 %v2294_v30 }
 0x115   :  { %2825 = vrot.lane.b32.xlu1 %v3938_v12, %s2901_s19  ;;  %v3486_v27 = vsel %vm222_vm6, %v3941_v55, %v3940_v1  ;;  %v154_v18 = vsel %vm149_vm5, %v2462_v56, %v2532_v60  ;;  %v156_v42 = vsel %vm149_vm5, %v2463_v52, %v2537_v49  ;;  %v2468_v26 = vunpack.i.h.bf16 %v3249_v6  ;;  %v2546_v53 = vpop.permute.xlu1 %2545  ;;  %v2541_v13 = vpop.permute.xlu0 %2540 }
 0x116   :  { %v3493_v58 = vsel %vm222_vm6, %v3943_v2, %v3942_v3  ;;  %v2467_v37 = vunpack.i.l.bf16 %v3249_v6  ;;  %v2224_v62 = vpack.c.bf16 %v157_v39, %v155_v4  ;;  %v2226_v12 = vpack.c.bf16 %v156_v42, %v154_v18 }
 0x117   :  { %v2548_v7 = vunpack.i.h.bf16 %v2546_v53  ;;  %v2547_v1 = vunpack.i.l.bf16 %v2546_v53  ;;  %v2543_v34 = vunpack.i.h.bf16 %v2541_v13  ;;  %v2542_v55 = vunpack.i.l.bf16 %v2541_v13 }
 0x118   :  { %v2447_v35 = vunpack.i.l.bf16 %v3231_v57  ;;  %v3944_v56 = vpack.i.bf16 %v3339_v45, %v3335_v22  ;;  %v3945_v6 = vpack.i.bf16 %v3350_v17, %v3346_v19  ;;  %v3946_v52 = vunpack.i.h.bf16 %v3215_v46  ;;  %2225 = vmatprep.subr.bf16.mxu0 %v2224_v62 }
 0x119   :  { %v3947_v30 = vunpack.i.l.bf16 %v3215_v46  ;;  %v3948_v49 = vunpack.i.h.bf16 %v3217_v47  ;;  %v3526_v22 = vmul.f32 %v3030_v29, %v3189_v9  ;;  %v874_v45 = vsel %vm149_vm5, %v2542_v55, %v2543_v34  ;;  %2227 = vmatpush1.bf16.msra.mxu0 %v2226_v12  ;;  %v2556_v3 = vpop.permute.xlu1 %2555  ;;  %v2551_v2 = vpop.permute.xlu0 %2550 }
 0x11a   :  { %2835 = vrot.lane.b32.xlu1 %v3944_v56, %s2901_s19  ;;  %2830 = vrot.lane.b32.xlu0 %v3945_v6, %s2901_s19  ;;  %v876_v19 = vsel %vm149_vm5, %v2547_v1, %v2548_v7  ;;  %v873_v17 = vsel %vm149_vm5, %v2467_v37, %v2542_v55  ;;  %v875_v60 = vsel %vm149_vm5, %v2468_v26, %v2547_v1  ;;  %v2558_v42 = vunpack.i.h.bf16 %v2556_v3 }
 0x11b   :  { %v3515_v40 = vsel %vm222_vm6, %v3947_v30, %v3946_v52  ;;  %v3522_v57 = vsel %vm222_vm6, %v2437_v59, %v3948_v49  ;;  %v2296_v4 = vpack.c.bf16 %v876_v19, %v874_v45  ;;  %v2298_v39 = vpack.c.bf16 %v875_v60, %v873_v17 }
 0x11c   :  { %v2302_v18 = vpack.c.bf16 %v3493_v58, %v3486_v27  ;;  %v1410_v29 = vmul.f32 %v3040_v31, %v3189_v9  ;;  %v2557_v53 = vunpack.i.l.bf16 %v2556_v3  ;;  %v2553_v13 = vunpack.i.h.bf16 %v2551_v2 }
 0x11d   :  { %v2552_v62 = vunpack.i.l.bf16 %v2551_v2  ;;  %v3949_v37 = vpack.c.bf16 %v3362_v61, %v3359_v11  ;;  %v2473_v26 = vunpack.i.h.bf16 %v3261_v20  ;;  %v2472_v12 = vunpack.i.l.bf16 %v3261_v20  ;;  %2297 = vmatprep.subr.bf16.mxu1 %v2296_v4 }
 0x11e   :  { %v3950_v7 = vpack.i.bf16 %v3291_v54, %v3354_v16  ;;  %v3951_v31 = vpack.i.bf16 %v3291_v54, %v3366_v10  ;;  %v743_v27 = vmul.f32 %v3189_v9, %v3004_v23  ;;  %v746_v11 = vmul.f32 %v3189_v9, %v3014_v25  ;;  %2299 = vmatpush1.bf16.msra.mxu1 %v2298_v39  ;;  %v2566_v25 = vpop.permute.xlu1 %2565  ;;  %v2561_v9 = vpop.permute.xlu0 %2560 }
 0x11f   :  { %2229 = vmatprep.subr.bf16.mxu0 %v3949_v37  ;;  %v327_v61 = vsel %vm325_vm4, %v2552_v62, %v2553_v13  ;;  %v2304_v20 = vpack.c.bf16 %v3522_v57, %v3515_v40  ;;  %v3952_v16 = vmov %v3947_v30  ;;  %v947_v10 = vsel %vm222_vm6, %v2448_v33, %v2437_v59 }
 0x120   :  { %2845 = vrot.lane.b32.xlu1 %v3950_v7, %s2901_s19  ;;  %2840 = vrot.lane.b32.xlu0 %v3951_v31, %s2901_s19  ;;  %v945_v58 = vsel %vm222_vm6, %v2447_v35, %v3952_v16  ;;  %v3953_v23 = vpack.c.bf16 %v3380_v28, %v3377_v21  ;;  %v329_v1 = vsel %vm325_vm4, %v2557_v53, %v2558_v42  ;;  %v2568_v46 = vunpack.i.h.bf16 %v2566_v25 }
 0x121   :  { %v326_v34 = vsel %vm325_vm4, %v2472_v12, %v2552_v62  ;;  %v328_v55 = vsel %vm325_vm4, %v2473_v26, %v2557_v53  ;;  %v2567_v56 = vunpack.i.l.bf16 %v2566_v25  ;;  %v2563_v35 = vunpack.i.h.bf16 %v2561_v9 }
 0x122   :  { %2231 = vmatpush1.bf16.msra.mxu0 %v3953_v23  ;;  %v2562_v6 = vunpack.i.l.bf16 %v2561_v9  ;;  %v3954_v47 = vpack.c.bf16 %v3394_v38, %v3389_v41  ;;  %v3955_v21 = vpack.c.bf16 %v3419_v48, %v3414_v5  ;;  %v2864_v28 = vpack.i.bf16 %v1410_v29, %v3526_v22  ;;  %v2576_v54 = vpop.permute.xlu1 %2575  ;;  %v2571_v14 = vpop.permute.xlu0 %2570 }
 0x123   :  { %v2859_v59 = vpack.i.bf16 %v746_v11, %v743_v27  ;;  %v2306_v33 = vpack.c.bf16 %v947_v10, %v945_v58  ;;  %v2478_v41 = vunpack.i.h.bf16 %v3259_v15  ;;  %v2236_v38 = vpack.c.bf16 %v329_v1, %v327_v61 }
 0x124   :  { %2233 = vmatprep.subr.bf16.mxu0 %v3954_v47  ;;  %2301 = vmatprep.subr.bf16.mxu1 %v3955_v21  ;;  %v1026_v48 = vsel %vm325_vm4, %v2562_v6, %v2563_v35  ;;  %v1028_v5 = vsel %vm325_vm4, %v2567_v56, %v2568_v46  ;;  %v2477_v52 = vunpack.i.l.bf16 %v3259_v15  ;;  %v2578_v30 = vunpack.i.h.bf16 %v2576_v54 }
 0x125   :  { %2855 = vrot.lane.b32.xlu1 %v2854_v0, %s2901_s19  ;;  %2850 = vrot.lane.b32.xlu0 %v2849_v44, %s2901_s19  ;;  %v2482_v0 = vunpack.i.l.bf16 %v3287_v51  ;;  %v2238_v44 = vpack.c.bf16 %v328_v55, %v326_v34  ;;  %v2577_v40 = vunpack.i.l.bf16 %v2576_v54  ;;  %v2573_v49 = vunpack.i.h.bf16 %v2571_v14 }
 0x126   :  { %2235 = vmatpush1.bf16.msra.mxu0 %v2234_v63  ;;  %2303 = vmatpush1.bf16.msra.mxu1 %v2302_v18  ;;  %v2572_v57 = vunpack.i.l.bf16 %v2571_v14  ;;  %v2308_v15 = vpack.c.bf16 %v1028_v5, %v1026_v48  ;;  %v1025_v51 = vsel %vm325_vm4, %v2477_v52, %v2562_v6  ;;  %v1027_v32 = vsel %vm325_vm4, %v2478_v41, %v2567_v56  ;;  %v2586_v60 = vpop.permute.xlu1 %2585  ;;  %v2581_v3 = vpop.permute.xlu0 %2580 }
 0x127   :  { %2237 = vmatprep.subr.bf16.mxu0 %v2236_v38  ;;  %2305 = vmatprep.subr.bf16.mxu1 %v2304_v20  ;;  %v333_v63 = vsel %vm325_vm4, %v2577_v40, %v2578_v30  ;;  %v332_v45 = vsel %vm325_vm4, %v2483_v24, %v2577_v40  ;;  %v2488_v19 = vunpack.i.h.bf16 %v3285_v50  ;;  %v2487_v17 = vunpack.i.l.bf16 %v3285_v50  ;;  %v2885_v40 = vld [vmem:[%s3924_s0 + $0x8] sm:$0xff] }
 0x128   :  { %v331_v43 = vsel %vm325_vm4, %v2572_v57, %v2573_v49  ;;  %v330_v22 = vsel %vm325_vm4, %v2482_v0, %v2572_v57  ;;  %v2588_v39 = vunpack.i.h.bf16 %v2586_v60  ;;  %v2587_v18 = vunpack.i.l.bf16 %v2586_v60  ;;  %v2886_v49 = vld [vmem:[%s3925_s1 + $0x8] sm:$0xff] }
 0x129   :  { %2865 = vrot.lane.b32.xlu1 %v2864_v28, %s2901_s19  ;;  %2860 = vrot.lane.b32.xlu0 %v2859_v59, %s2901_s19  ;;  %v2240_v2 = vpack.c.bf16 %v333_v63, %v331_v43  ;;  %v2242_v4 = vpack.c.bf16 %v332_v45, %v330_v22  ;;  %v2583_v29 = vunpack.i.h.bf16 %v2581_v3  ;;  %v2582_v42 = vunpack.i.l.bf16 %v2581_v3  ;;  %v3957_v63 = vld [vmem:[#allocation4_spill] sm:$0xff] }
 0x12a   :  { %2239 = vmatpush1.bf16.msra.mxu0 %v2238_v44  ;;  %2307 = vmatpush1.bf16.msra.mxu1 %v2306_v33  ;;  %v2310_v53 = vpack.c.bf16 %v1027_v32, %v1025_v51  ;;  %v1032_v62 = vsel %vm325_vm4, %v2587_v18, %v2588_v39  ;;  %v1031_v50 = vsel %vm325_vm4, %v2488_v19, %v2587_v18  ;;  %v2493_v26 = vunpack.i.h.bf16 %v3313_v8  ;;  %v2596_v7 = vpop.permute.xlu1 %2595  ;;  %v2591_v31 = vpop.permute.xlu0 %2590 }
 0x12b   :  { %2309 = vmatprep.subr.bf16.mxu1 %v2308_v15  ;;  %2241 = vmatprep.subr.bf16.mxu0 %v2240_v2  ;;  %v1030_v13 = vsel %vm325_vm4, %v2582_v42, %v2583_v29  ;;  %v1029_v37 = vsel %vm325_vm4, %v2487_v17, %v2582_v42  ;;  %v2492_v12 = vunpack.i.l.bf16 %v3313_v8  ;;  %v2598_v61 = vunpack.i.h.bf16 %v2596_v7  ;;  %v2887_v29 = vld [vmem:[%s3924_s0] sm:$0xff] }
 0x12c   :  { %v2312_v27 = vpack.c.bf16 %v1032_v62, %v1030_v13  ;;  %v2314_v11 = vpack.c.bf16 %v1031_v50, %v1029_v37  ;;  %v2597_v20 = vunpack.i.l.bf16 %v2596_v7  ;;  %v2593_v16 = vunpack.i.h.bf16 %v2591_v31  ;;  %v2888_v42 = vld [vmem:[%s3925_s1] sm:$0xff] }
 0x12d   :  { %v2592_v58 = vunpack.i.l.bf16 %v2591_v31  ;;  %v2498_v8 = vunpack.i.h.bf16 %v3311_v36  ;;  %v2497_v1 = vunpack.i.l.bf16 %v3311_v36  ;;  %v3956_v36 = vld [vmem:[#allocation5_spill] sm:$0xff]  ;;  %v2252_v57 = vpack.c.bf16 %v2886_v49, %v2885_v40 }
 0x12e   :  { %2243 = vmatpush1.bf16.msra.mxu0 %v2242_v4  ;;  %2311 = vmatpush1.bf16.msra.mxu1 %v2310_v53  ;;  %v423_v23 = vsel %vm419_vm3, %v2597_v20, %v2598_v61  ;;  %v422_v9 = vsel %vm419_vm3, %v2493_v26, %v2597_v20  ;;  %v2606_v34 = vpop.permute.xlu1 %2605  ;;  %v2601_v55 = vpop.permute.xlu0 %2600  ;;  %v2503_v38 = vunpack.i.h.bf16 %v3956_v36  ;;  %v2502_v48 = vunpack.i.l.bf16 %v3956_v36  ;;  %v2891_v20 = vld [vmem:[%s3924_s0 + $0x18] sm:$0xff] }
 0x12f   :  { %2313 = vmatprep.subr.bf16.mxu1 %v2312_v27  ;;  %v421_v10 = vsel %vm419_vm3, %v2592_v58, %v2593_v16  ;;  %v420_v25 = vsel %vm419_vm3, %v2492_v12, %v2592_v58  ;;  %v2608_v35 = vunpack.i.h.bf16 %v2606_v34  ;;  %v2607_v6 = vunpack.i.l.bf16 %v2606_v34  ;;  %v2889_v27 = vld [vmem:[%s3925_s1 + $0x18] sm:$0xff] }
 0x130   :  { %v2244_v46 = vpack.c.bf16 %v423_v23, %v421_v10  ;;  %v2246_v56 = vpack.c.bf16 %v422_v9, %v420_v25  ;;  %v2603_v47 = vunpack.i.h.bf16 %v2601_v55  ;;  %v2602_v21 = vunpack.i.l.bf16 %v2601_v55  ;;  %v2892_v16 = vld [vmem:[%s3925_s1 + $0x38] sm:$0xff]  ;;  %v2895_v55 = vld [vmem:[%s3924_s0 + $0x10] sm:$0xff] }
 0x131   :  { %v1112_v59 = vsel %vm419_vm3, %v2607_v6, %v2608_v35  ;;  %v1111_v41 = vsel %vm419_vm3, %v2498_v8, %v2607_v6  ;;  %v2508_v22 = vunpack.i.h.bf16 %v3957_v63  ;;  %v2507_v45 = vunpack.i.l.bf16 %v3957_v63  ;;  %v2893_v8 = vld [vmem:[%s3925_s1 + $0x10] sm:$0xff] }
 0x132   :  { %2315 = vmatpush1.bf16.msra.mxu1 %v2314_v11  ;;  %2245 = vmatprep.subr.bf16.mxu0 %v2244_v46  ;;  %v1110_v28 = vsel %vm419_vm3, %v2602_v21, %v2603_v47  ;;  %v1109_v33 = vsel %vm419_vm3, %v2497_v1, %v2602_v21  ;;  %v2616_v5 = vpop.permute.xlu1 %2615  ;;  %v2611_v52 = vpop.permute.xlu0 %2610  ;;  %v2254_v53 = vpack.c.bf16 %v2888_v42, %v2887_v29  ;;  %v2890_v11 = vld [vmem:[%s3925_s1 + $0x28] sm:$0xff]  ;;  %v2894_v1 = vld [vmem:[%s3925_s1 + $0x20] sm:$0xff]  ;;  %v2896_v46 = vld [vmem:[%s3925_s1 + $0x30] sm:$0xff] }
 0x133   :  { %2247 = vmatpush1.bf16.msra.mxu0 %v2246_v56  ;;  %v2316_v24 = vpack.c.bf16 %v1112_v59, %v1110_v28  ;;  %v2318_v0 = vpack.c.bf16 %v1111_v41, %v1109_v33  ;;  %v2618_v54 = vunpack.i.h.bf16 %v2616_v5  ;;  %v2617_v14 = vunpack.i.l.bf16 %v2616_v5  ;;  %v2897_v28 = vld [vmem:[%s3925_s1 + $0x48] sm:$0xff]  ;;  %v2898_v59 = vld [vmem:[%s3925_s1 + $0x58] sm:$0xff] }
 0x134   :  { %v2613_v44 = vunpack.i.h.bf16 %v2611_v52  ;;  %v2612_v30 = vunpack.i.l.bf16 %v2611_v52  ;;  %v2256_v61 = vpack.c.bf16 %v2890_v11, %v2889_v27  ;;  %v2324_v58 = vpack.c.bf16 %v2892_v16, %v2891_v20  ;;  %v2899_v52 = vld [vmem:[%s3925_s1 + $0x40] sm:$0xff] }
 0x135   :  { %2317 = vmatprep.subr.bf16.mxu1 %v2316_v24  ;;  %v427_v51 = vsel %vm419_vm3, %v2617_v14, %v2618_v54  ;;  %v426_v43 = vsel %vm419_vm3, %v2503_v38, %v2617_v14  ;;  %v2258_v34 = vpack.c.bf16 %v2894_v1, %v2893_v8  ;;  %v2326_v56 = vpack.c.bf16 %v2896_v46, %v2895_v55  ;;  %v2900_v24 = vld [vmem:[%s3925_s1 + $0x50] sm:$0xff] }
 0x136   :  { %2319 = vmatpush1.bf16.msra.mxu1 %v2318_v0  ;;  %v425_v15 = vsel %vm419_vm3, %v2612_v30, %v2613_v44  ;;  %v424_v32 = vsel %vm419_vm3, %v2502_v48, %v2612_v30  ;;  %v2626_v19 = vpop.permute.xlu1 %2625  ;;  %v2621_v17 = vpop.permute.xlu0 %2620  ;;  %v2328_v33 = vpack.c.bf16 %v2898_v59, %v2897_v28  ;;  %v2330_v0 = vpack.c.bf16 %v2900_v24, %v2899_v52 }
 0x137   :  { %v2248_v60 = vpack.c.bf16 %v427_v51, %v425_v15  ;;  %v2250_v3 = vpack.c.bf16 %v426_v43, %v424_v32  ;;  %v2628_v2 = vunpack.i.h.bf16 %v2626_v19  ;;  %v2627_v4 = vunpack.i.l.bf16 %v2626_v19 }
 0x138   :  { %v2623_v39 = vunpack.i.h.bf16 %v2621_v17  ;;  %v2622_v18 = vunpack.i.l.bf16 %v2621_v17 }
 0x139   :  { %2249 = vmatprep.subr.bf16.mxu0 %v2248_v60  ;;  %v1116_v62 = vsel %vm419_vm3, %v2627_v4, %v2628_v2  ;;  %v1115_v50 = vsel %vm419_vm3, %v2508_v22, %v2627_v4 }
 0x13a   :  { %2251 = vmatpush1.bf16.msra.mxu0 %v2250_v3  ;;  %v1114_v13 = vsel %vm419_vm3, %v2622_v18, %v2623_v39  ;;  %v1113_v37 = vsel %vm419_vm3, %v2507_v45, %v2622_v18  ;;  %v2636_v26 = vpop.permute.xlu1 %2635  ;;  %v2631_v12 = vpop.permute.xlu0 %2630 }
 0x13b   :  { %2253 = vmatprep.subr.bf16.mxu0 %v2252_v57  ;;  %v2320_v7 = vpack.c.bf16 %v1116_v62, %v1114_v13  ;;  %v2322_v31 = vpack.c.bf16 %v1115_v50, %v1113_v37  ;;  %v2638_v10 = vunpack.i.h.bf16 %v2636_v26  ;;  %v2637_v23 = vunpack.i.l.bf16 %v2636_v26 }
 0x13c   :  { %v2633_v25 = vunpack.i.h.bf16 %v2631_v12  ;;  %v2632_v9 = vunpack.i.l.bf16 %v2631_v12 }
 0x13d   :  { %2321 = vmatprep.subr.bf16.mxu1 %v2320_v7  ;;  %v531_v6 = vsel %vm366_vm2, %v2637_v23, %v2638_v10 }
 0x13e   :  { %2255 = vmatpush1.bf16.msra.mxu0 %v2254_v53  ;;  %2323 = vmatpush1.bf16.msra.mxu1 %v2322_v31  ;;  %v529_v35 = vsel %vm366_vm2, %v2632_v9, %v2633_v25  ;;  %v2651_v47 = vpop.permute.xlu1 %2650  ;;  %v2641_v21 = vpop.permute.xlu0 %2640 }
 0x13f   :  { %2257 = vmatprep.subr.bf16.mxu0 %v2256_v61  ;;  %2325 = vmatprep.subr.bf16.mxu1 %v2324_v58  ;;  %v2653_v41 = vunpack.i.h.bf16 %v2651_v47  ;;  %v2652_v36 = vunpack.i.l.bf16 %v2651_v47  ;;  %v2643_v38 = vunpack.i.h.bf16 %v2641_v21  ;;  %v2642_v48 = vunpack.i.l.bf16 %v2641_v21 }
 0x140   :  { %v2260_v5 = vpack.c.bf16 %v531_v6, %v529_v35 }
 0x141   :  { %v1210_v54 = vsel %vm366_vm2, %v2642_v48, %v2643_v38  ;;  %v1212_v14 = vsel %vm366_vm2, %v2652_v36, %v2653_v41 }
 0x142   :  { %2259 = vmatpush1.bf16.msra.mxu0 %v2258_v34  ;;  %2327 = vmatpush1.bf16.msra.mxu1 %v2326_v56  ;;  %v2656_v44 = vpop.permute.xlu1 %2655  ;;  %v2646_v30 = vpop.permute.xlu0 %2645  ;;  %v2332_v51 = vpack.c.bf16 %v1212_v14, %v1210_v54 }
 0x143   :  { %2261 = vmatprep.subr.bf16.mxu0 %v2260_v5  ;;  %2329 = vmatprep.subr.bf16.mxu1 %v2328_v33  ;;  %v2658_v40 = vunpack.i.h.bf16 %v2656_v44  ;;  %v2657_v49 = vunpack.i.l.bf16 %v2656_v44  ;;  %v2648_v57 = vunpack.i.h.bf16 %v2646_v30  ;;  %v2647_v15 = vunpack.i.l.bf16 %v2646_v30 }
 0x145   :  { %v528_v32 = vsel %vm366_vm2, %v2647_v15, %v2632_v9  ;;  %v530_v43 = vsel %vm366_vm2, %v2648_v57, %v2637_v23  ;;  %v1209_v63 = vsel %vm366_vm2, %v2657_v49, %v2642_v48  ;;  %v1211_v22 = vsel %vm366_vm2, %v2658_v40, %v2652_v36 }
 0x146   :  { %2331 = vmatpush1.bf16.msra.mxu1 %v2330_v0  ;;  %v2666_v45 = vpop.permute.xlu1 %2665  ;;  %v2661_v19 = vpop.permute.xlu0 %2660  ;;  %v2262_v17 = vpack.c.bf16 %v530_v43, %v528_v32  ;;  %v2334_v60 = vpack.c.bf16 %v1211_v22, %v1209_v63 }
 0x147   :  { %2333 = vmatprep.subr.bf16.mxu1 %v2332_v51  ;;  %v2668_v3 = vunpack.i.h.bf16 %v2666_v45  ;;  %v2667_v2 = vunpack.i.l.bf16 %v2666_v45  ;;  %v2663_v4 = vunpack.i.h.bf16 %v2661_v19  ;;  %v2662_v39 = vunpack.i.l.bf16 %v2661_v19 }
 0x148   :  { %2263 = vmatpush1.bf16.msra.mxu0 %v2262_v17 }
 0x149   :  { %v533_v18 = vsel %vm366_vm2, %v2662_v39, %v2663_v4  ;;  %v535_v29 = vsel %vm366_vm2, %v2667_v2, %v2668_v3 }
 0x14a   :  { %2335 = vmatpush1.bf16.msra.mxu1 %v2334_v60  ;;  %v2676_v42 = vpop.permute.xlu1 %2675  ;;  %v2671_v53 = vpop.permute.xlu0 %2670  ;;  %v2264_v13 = vpack.c.bf16 %v535_v29, %v533_v18 }
 0x14b   :  { %v2678_v62 = vunpack.i.h.bf16 %v2676_v42  ;;  %v2677_v37 = vunpack.i.l.bf16 %v2676_v42  ;;  %v2673_v50 = vunpack.i.h.bf16 %v2671_v53  ;;  %v2672_v26 = vunpack.i.l.bf16 %v2671_v53 }
 0x14c   :  { %2265 = vmatprep.subr.bf16.mxu0 %v2264_v13 }
 0x14d   :  { %v1214_v12 = vsel %vm366_vm2, %v2672_v26, %v2673_v50  ;;  %v1216_v7 = vsel %vm366_vm2, %v2677_v37, %v2678_v62 }
 0x14e   :  { %v2686_v31 = vpop.permute.xlu1 %2685  ;;  %v2681_v27 = vpop.permute.xlu0 %2680  ;;  %v2336_v11 = vpack.c.bf16 %v1216_v7, %v1214_v12 }
 0x14f   :  { %v2688_v61 = vunpack.i.h.bf16 %v2686_v31  ;;  %v2687_v20 = vunpack.i.l.bf16 %v2686_v31  ;;  %v2683_v16 = vunpack.i.h.bf16 %v2681_v27  ;;  %v2682_v58 = vunpack.i.l.bf16 %v2681_v27 }
 0x150   :  { %2337 = vmatprep.subr.bf16.mxu1 %v2336_v11 }
 0x151   :  { %v532_v10 = vsel %vm366_vm2, %v2682_v58, %v2662_v39  ;;  %v534_v23 = vsel %vm366_vm2, %v2683_v16, %v2667_v2  ;;  %v1213_v25 = vsel %vm366_vm2, %v2687_v20, %v2672_v26  ;;  %v1215_v9 = vsel %vm366_vm2, %v2688_v61, %v2677_v37 }
 0x152   :  { %v2696_v8 = vpop.permute.xlu1 %2695  ;;  %v2691_v1 = vpop.permute.xlu0 %2690  ;;  %v2266_v34 = vpack.c.bf16 %v534_v23, %v532_v10  ;;  %v2338_v55 = vpack.c.bf16 %v1215_v9, %v1213_v25 }
 0x153   :  { %v2698_v46 = vunpack.i.h.bf16 %v2696_v8  ;;  %v2697_v56 = vunpack.i.l.bf16 %v2696_v8  ;;  %v2693_v35 = vunpack.i.h.bf16 %v2691_v1  ;;  %v2692_v6 = vunpack.i.l.bf16 %v2691_v1 }
 0x154   :  { %2267 = vmatpush1.bf16.msra.mxu0 %v2266_v34  ;;  %2339 = vmatpush1.bf16.msra.mxu1 %v2338_v55 }
 0x155   :  { %v621_v47 = vsel %vm272_vm1, %v2692_v6, %v2693_v35  ;;  %v623_v21 = vsel %vm272_vm1, %v2697_v56, %v2698_v46 }
 0x156   :  { %v2706_v28 = vpop.permute.xlu1 %2705  ;;  %v2701_v59 = vpop.permute.xlu0 %2700  ;;  %v2268_v33 = vpack.c.bf16 %v623_v21, %v621_v47 }
 0x157   :  { %v2708_v41 = vunpack.i.h.bf16 %v2706_v28  ;;  %v2707_v36 = vunpack.i.l.bf16 %v2706_v28  ;;  %v2703_v38 = vunpack.i.h.bf16 %v2701_v59  ;;  %v2702_v48 = vunpack.i.l.bf16 %v2701_v59 }
 0x158   :  { %2269 = vmatprep.subr.bf16.mxu0 %v2268_v33 }
 0x159   :  { %v1294_v5 = vsel %vm272_vm1, %v2702_v48, %v2703_v38  ;;  %v1296_v52 = vsel %vm272_vm1, %v2707_v36, %v2708_v41 }
 0x15a   :  { %v2716_v24 = vpop.permute.xlu1 %2715  ;;  %v2711_v0 = vpop.permute.xlu0 %2710  ;;  %v2340_v54 = vpack.c.bf16 %v1296_v52, %v1294_v5 }
 0x15b   :  { %v2718_v14 = vunpack.i.h.bf16 %v2716_v24  ;;  %v2717_v44 = vunpack.i.l.bf16 %v2716_v24  ;;  %v2713_v30 = vunpack.i.h.bf16 %v2711_v0  ;;  %v2712_v40 = vunpack.i.l.bf16 %v2711_v0 }
 0x15c   :  { %2341 = vmatprep.subr.bf16.mxu1 %v2340_v54 }
 0x15d   :  { %v620_v49 = vsel %vm272_vm1, %v2712_v40, %v2692_v6  ;;  %v622_v57 = vsel %vm272_vm1, %v2713_v30, %v2697_v56  ;;  %v1293_v15 = vsel %vm272_vm1, %v2717_v44, %v2702_v48  ;;  %v1295_v51 = vsel %vm272_vm1, %v2718_v14, %v2707_v36 }
 0x15e   :  { %v2726_v32 = vpop.permute.xlu1 %2725  ;;  %v2721_v43 = vpop.permute.xlu0 %2720  ;;  %v2270_v63 = vpack.c.bf16 %v622_v57, %v620_v49  ;;  %v2342_v22 = vpack.c.bf16 %v1295_v51, %v1293_v15 }
 0x15f   :  { %v2728_v45 = vunpack.i.h.bf16 %v2726_v32  ;;  %v2727_v19 = vunpack.i.l.bf16 %v2726_v32  ;;  %v2723_v17 = vunpack.i.h.bf16 %v2721_v43  ;;  %v2722_v60 = vunpack.i.l.bf16 %v2721_v43 }
 0x160   :  { %2271 = vmatpush1.bf16.msra.mxu0 %v2270_v63  ;;  %2343 = vmatpush1.bf16.msra.mxu1 %v2342_v22 }
 0x161   :  { %v625_v3 = vsel %vm272_vm1, %v2722_v60, %v2723_v17  ;;  %v627_v2 = vsel %vm272_vm1, %v2727_v19, %v2728_v45 }
 0x162   :  { %v2736_v4 = vpop.permute.xlu1 %2735  ;;  %v2731_v39 = vpop.permute.xlu0 %2730  ;;  %v2272_v18 = vpack.c.bf16 %v627_v2, %v625_v3 }
 0x163   :  { %v2738_v29 = vunpack.i.h.bf16 %v2736_v4  ;;  %v2737_v42 = vunpack.i.l.bf16 %v2736_v4  ;;  %v2733_v53 = vunpack.i.h.bf16 %v2731_v39  ;;  %v2732_v13 = vunpack.i.l.bf16 %v2731_v39 }
 0x164   :  { %2273 = vmatprep.subr.bf16.mxu0 %v2272_v18 }
 0x165   :  { %v1298_v62 = vsel %vm272_vm1, %v2732_v13, %v2733_v53  ;;  %v1300_v37 = vsel %vm272_vm1, %v2737_v42, %v2738_v29 }
 0x166   :  { %v2746_v50 = vpop.permute.xlu1 %2745  ;;  %v2741_v26 = vpop.permute.xlu0 %2740  ;;  %v2344_v12 = vpack.c.bf16 %v1300_v37, %v1298_v62 }
 0x167   :  { %v2748_v7 = vunpack.i.h.bf16 %v2746_v50  ;;  %v2747_v31 = vunpack.i.l.bf16 %v2746_v50  ;;  %v2743_v27 = vunpack.i.h.bf16 %v2741_v26  ;;  %v2742_v11 = vunpack.i.l.bf16 %v2741_v26 }
 0x168   :  { %2345 = vmatprep.subr.bf16.mxu1 %v2344_v12 }
 0x169   :  { %v624_v61 = vsel %vm272_vm1, %v2742_v11, %v2722_v60  ;;  %v626_v20 = vsel %vm272_vm1, %v2743_v27, %v2727_v19  ;;  %v1297_v16 = vsel %vm272_vm1, %v2747_v31, %v2732_v13  ;;  %v1299_v58 = vsel %vm272_vm1, %v2748_v7, %v2737_v42 }
 0x16a   :  { %v2756_v10 = vpop.permute.xlu1 %2755  ;;  %v2751_v23 = vpop.permute.xlu0 %2750  ;;  %v2274_v25 = vpack.c.bf16 %v626_v20, %v624_v61  ;;  %v2346_v9 = vpack.c.bf16 %v1299_v58, %v1297_v16 }
 0x16b   :  { %v2758_v8 = vunpack.i.h.bf16 %v2756_v10  ;;  %v2757_v1 = vunpack.i.l.bf16 %v2756_v10  ;;  %v2753_v34 = vunpack.i.h.bf16 %v2751_v23  ;;  %v2752_v55 = vunpack.i.l.bf16 %v2751_v23 }
 0x16c   :  { %2275 = vmatpush1.bf16.msra.mxu0 %v2274_v25  ;;  %2347 = vmatpush1.bf16.msra.mxu1 %v2346_v9 }
 0x16d   :  { %v694_v46 = vsel %vm692_vm7, %v2752_v55, %v2753_v34  ;;  %v696_v56 = vsel %vm692_vm7, %v2757_v1, %v2758_v8  ;;  %v1473_v8 = vld [vmem:[%s3926_s2] sm:$0xff] }
 0x16e   :  { %v2766_v35 = vpop.permute.xlu1 %2765  ;;  %v2761_v6 = vpop.permute.xlu0 %2760  ;;  %v2276_v47 = vpack.c.bf16 %v696_v56, %v694_v46 }
 0x16f   :  { %v2768_v21 = vunpack.i.h.bf16 %v2766_v35  ;;  %v2767_v28 = vunpack.i.l.bf16 %v2766_v35  ;;  %v2763_v59 = vunpack.i.h.bf16 %v2761_v6  ;;  %v2762_v33 = vunpack.i.l.bf16 %v2761_v6 }
 0x170   :  { %2277 = vmatprep.subr.bf16.mxu0 %v2276_v47 }
 0x171   :  { %v1366_v41 = vsel %vm692_vm7, %v2762_v33, %v2763_v59  ;;  %v1368_v36 = vsel %vm692_vm7, %v2767_v28, %v2768_v21  ;;  %v1476_v59 = vld [vmem:[%s3926_s2 + $0x18] sm:$0xff] }
 0x172   :  { %v2776_v38 = vpop.permute.xlu1 %2775  ;;  %v2771_v48 = vpop.permute.xlu0 %2770  ;;  %v2348_v5 = vpack.c.bf16 %v1368_v36, %v1366_v41  ;;  %v1480_v36 = vld [vmem:[%s3926_s2 + $0x38] sm:$0xff] }
 0x173   :  { %v2778_v52 = vunpack.i.h.bf16 %v2776_v38  ;;  %v2777_v24 = vunpack.i.l.bf16 %v2776_v38  ;;  %v2773_v0 = vunpack.i.h.bf16 %v2771_v48  ;;  %v2772_v54 = vunpack.i.l.bf16 %v2771_v48 }
 0x174   :  { %2349 = vmatprep.subr.bf16.mxu1 %v2348_v5 }
 0x175   :  { %v693_v14 = vsel %vm692_vm7, %v2772_v54, %v2752_v55  ;;  %v695_v44 = vsel %vm692_vm7, %v2773_v0, %v2757_v1  ;;  %v1365_v30 = vsel %vm692_vm7, %v2777_v24, %v2762_v33  ;;  %v1367_v40 = vsel %vm692_vm7, %v2778_v52, %v2767_v28  ;;  %v1477_v55 = vld [vmem:[%s3926_s2 + $0x20] sm:$0xff] }
 0x176   :  { %v2786_v49 = vpop.permute.xlu1 %2785  ;;  %v2781_v57 = vpop.permute.xlu0 %2780  ;;  %v2278_v15 = vpack.c.bf16 %v695_v44, %v693_v14  ;;  %v2350_v51 = vpack.c.bf16 %v1367_v40, %v1365_v30  ;;  %v1479_v14 = vld [vmem:[%s3926_s2 + $0x30] sm:$0xff] }
 0x177   :  { %v2788_v32 = vunpack.i.h.bf16 %v2786_v49  ;;  %v2787_v43 = vunpack.i.l.bf16 %v2786_v49  ;;  %v2783_v63 = vunpack.i.h.bf16 %v2781_v57  ;;  %v2782_v22 = vunpack.i.l.bf16 %v2781_v57 }
 0x178   :  { %2279 = vmatpush1.bf16.msra.mxu0 %v2278_v15  ;;  %2351 = vmatpush1.bf16.msra.mxu1 %v2350_v51 }
 0x179   :  { %v698_v45 = vsel %vm692_vm7, %v2782_v22, %v2783_v63  ;;  %v700_v19 = vsel %vm692_vm7, %v2787_v43, %v2788_v32 }
 0x17a   :  { %v2796_v17 = vpop.permute.xlu1 %2795  ;;  %v2791_v60 = vpop.permute.xlu0 %2790  ;;  %v2280_v3 = vpack.c.bf16 %v700_v19, %v698_v45 }
 0x17b   :  { %v2798_v2 = vunpack.i.h.bf16 %v2796_v17  ;;  %v2797_v4 = vunpack.i.l.bf16 %v2796_v17  ;;  %v2793_v39 = vunpack.i.h.bf16 %v2791_v60  ;;  %v2792_v18 = vunpack.i.l.bf16 %v2791_v60  ;;  %v1482_v17 = vld [vmem:[%s3926_s2 + $0x48] sm:$0xff] }
 0x17c   :  { %2281 = vmatprep.subr.bf16.mxu0 %v2280_v3 }
 0x17d   :  { %v1370_v29 = vsel %vm692_vm7, %v2792_v18, %v2793_v39  ;;  %v1372_v42 = vsel %vm692_vm7, %v2797_v4, %v2798_v2 }
 0x17e   :  { %v2806_v53 = vpop.permute.xlu1 %2805  ;;  %v2801_v13 = vpop.permute.xlu0 %2800  ;;  %v2352_v62 = vpack.c.bf16 %v1372_v42, %v1370_v29 }
 0x17f   :  { %v2808_v37 = vunpack.i.h.bf16 %v2806_v53  ;;  %v2807_v50 = vunpack.i.l.bf16 %v2806_v53  ;;  %v2803_v26 = vunpack.i.h.bf16 %v2801_v13  ;;  %v2802_v12 = vunpack.i.l.bf16 %v2801_v13 }
 0x180   :  { %2353 = vmatprep.subr.bf16.mxu1 %v2352_v62  ;;  %v3958_v13 = vmov 0.0  }
 0x181   :  { %v697_v7 = vsel %vm692_vm7, %v2802_v12, %v2782_v22  ;;  %v699_v31 = vsel %vm692_vm7, %v2803_v26, %v2787_v43  ;;  %v1369_v27 = vsel %vm692_vm7, %v2807_v50, %v2792_v18  ;;  %v1371_v11 = vsel %vm692_vm7, %v2808_v37, %v2797_v4  ;;  %v1483_v43 = vld [vmem:[%s3926_s2 + $0x50] sm:$0xff] }
 0x182   :  { %v2816_v61 = vpop.permute.xlu1 %2815  ;;  %v2811_v20 = vpop.permute.xlu0 %2810  ;;  %v2282_v16 = vpack.c.bf16 %v699_v31, %v697_v7  ;;  %v2354_v58 = vpack.c.bf16 %v1371_v11, %v1369_v27 }
 0x183   :  { %v2818_v10 = vunpack.i.h.bf16 %v2816_v61  ;;  %v2817_v23 = vunpack.i.l.bf16 %v2816_v61  ;;  %v2813_v25 = vunpack.i.h.bf16 %v2811_v20  ;;  %v2812_v9 = vunpack.i.l.bf16 %v2811_v20 }
 0x184   :  { %2283 = vmatpush1.bf16.msra.mxu0 %v2282_v16  ;;  %2355 = vmatpush1.bf16.msra.mxu1 %v2354_v58 }
 0x185   :  { %v786_v1 = vsel %vm96_vm0, %v2812_v9, %v2813_v25  ;;  %v788_v34 = vsel %vm96_vm0, %v2817_v23, %v2818_v10  ;;  %v1475_v25 = vld [vmem:[%s3926_s2 + $0x10] sm:$0xff] }
 0x186   :  { %v2821_v56 = vpop.permute.xlu0 %2820  ;;  %v2284_v35 = vpack.c.bf16 %v788_v34, %v786_v1  ;;  %v1484_v1 = vld [vmem:[%s3926_s2 + $0x58] sm:$0xff] }
 0x187   :  { %v2826_v46 = vpop.permute.xlu1 %2825  ;;  %v2823_v21 = vunpack.i.h.bf16 %v2821_v56  ;;  %v2822_v28 = vunpack.i.l.bf16 %v2821_v56  ;;  %1707 = vmatmul.mubr.f32.vlgmr.msra.gmra.mrb[0].mxu0 %v1473_v8  ;;  %1885 = vmatmul.mubr.f32.vlgmr.msra.gmra.mrb[0].mxu1 %v1473_v8  ;;  %v1481_v8 = vld [vmem:[%s3926_s2 + $0x40] sm:$0xff] }
 0x188   :  { %v2828_v6 = vunpack.i.h.bf16 %v2826_v46  ;;  %v2827_v47 = vunpack.i.l.bf16 %v2826_v46  ;;  %2285 = vmatprep.subr.bf16.mxu0 %v2284_v35  ;;  %1712 = vmatprep.mubr.f32.mxu0 %v1477_v55 }
 0x189   :  { %v1450_v33 = vsel %vm96_vm0, %v2822_v28, %v2823_v21  ;;  %1890 = vmatprep.mubr.f32.mxu1 %v1477_v55 }
 0x18a   :  { %v1452_v41 = vsel %vm96_vm0, %v2827_v47, %v2828_v6 }
 0x18b   :  { %v2356_v5 = vpack.c.bf16 %v1452_v41, %v1450_v33  ;;  %1713 = vmatmul.mubr.f32.gmra.mrb[2].mxu0 %v1476_v59  ;;  %1891 = vmatmul.mubr.f32.gmra.mrb[2].mxu1 %v1476_v59 }
 0x18c   :  { %v2836_v38 = vpop.permute.xlu1 %2835  ;;  %v2831_v48 = vpop.permute.xlu0 %2830  ;;  %1718 = vmatprep.mubr.f32.mxu0 %v1480_v36  ;;  %1896 = vmatprep.mubr.f32.mxu1 %v1480_v36 }
 0x18d   :  { %v2838_v52 = vunpack.i.h.bf16 %v2836_v38  ;;  %v2837_v24 = vunpack.i.l.bf16 %v2836_v38  ;;  %v2833_v0 = vunpack.i.h.bf16 %v2831_v48  ;;  %v2832_v54 = vunpack.i.l.bf16 %v2831_v48  ;;  %2357 = vmatprep.subr.bf16.mxu1 %v2356_v5 }
 0x18f   :  { %v1449_v44 = vsel %vm96_vm0, %v2837_v24, %v2822_v28  ;;  %v1451_v30 = vsel %vm96_vm0, %v2838_v52, %v2827_v47  ;;  %v787_v40 = vsel %vm96_vm0, %v2833_v0, %v2817_v23  ;;  %v785_v49 = vsel %vm96_vm0, %v2832_v54, %v2812_v9  ;;  %1719 = vmatmul.mubr.f32.gmra.mrb[4].mxu0 %v1479_v14  ;;  %v1478_v9 = vld [vmem:[%s3926_s2 + $0x28] sm:$0xff] }
 0x190   :  { %v2358_v57 = vpack.c.bf16 %v1451_v30, %v1449_v44  ;;  %v2286_v15 = vpack.c.bf16 %v787_v40, %v785_v49  ;;  %1897 = vmatmul.mubr.f32.gmra.mrb[4].mxu1 %v1479_v14  ;;  %1724 = vmatprep.mubr.f32.mxu0 %v1483_v43 }
 0x191   :  { %1902 = vmatprep.mubr.f32.mxu1 %v1483_v43 }
 0x192   :  { %v2846_v51 = vpop.permute.xlu1 %2845  ;;  %v2841_v32 = vpop.permute.xlu0 %2840  ;;  %2287 = vmatpush1.bf16.msra.mxu0 %v2286_v15  ;;  %2359 = vmatpush1.bf16.msra.mxu1 %v2358_v57 }
 0x193   :  { %v2848_v63 = vunpack.i.h.bf16 %v2846_v51  ;;  %v2847_v22 = vunpack.i.l.bf16 %v2846_v51  ;;  %v2843_v45 = vunpack.i.h.bf16 %v2841_v32  ;;  %v2842_v19 = vunpack.i.l.bf16 %v2841_v32  ;;  %1725 = vmatmul.mubr.f32.gmra.mrb[6].mxu0 %v1482_v17 }
 0x194   :  { %1903 = vmatmul.mubr.f32.gmra.mrb[6].mxu1 %v1482_v17  ;;  %1795 = vmatprep.mubr.f32.mxu0 %v3958_v13 }
 0x195   :  { %v790_v60 = vsel %vm96_vm0, %v2842_v19, %v2843_v45  ;;  %v792_v3 = vsel %vm96_vm0, %v2847_v22, %v2848_v63  ;;  %1973 = vmatprep.mubr.f32.mxu1 %v3958_v13 }
 0x196   :  { %v2288_v39 = vpack.c.bf16 %v792_v3, %v790_v60 }
 0x197   :  { %v2856_v2 = vpop.permute.xlu1 %2855  ;;  %v2851_v4 = vpop.permute.xlu0 %2850 }
 0x198   :  { %v2858_v18 = vunpack.i.h.bf16 %v2856_v2  ;;  %v2857_v29 = vunpack.i.l.bf16 %v2856_v2  ;;  %v2853_v42 = vunpack.i.h.bf16 %v2851_v4  ;;  %v2852_v53 = vunpack.i.l.bf16 %v2851_v4  ;;  %2289 = vmatprep.subr.bf16.mxu0 %v2288_v39 }
 0x19a   :  { %v1454_v62 = vsel %vm96_vm0, %v2852_v53, %v2853_v42  ;;  %v1456_v37 = vsel %vm96_vm0, %v2857_v29, %v2858_v18 }
 0x19b   :  { %v2866_v50 = vpop.permute.xlu1 %2865  ;;  %v2861_v26 = vpop.permute.xlu0 %2860  ;;  %v2360_v12 = vpack.c.bf16 %v1456_v37, %v1454_v62 }
 0x19c   :  { %v2868_v7 = vunpack.i.h.bf16 %v2866_v50  ;;  %v2867_v31 = vunpack.i.l.bf16 %v2866_v50  ;;  %v2863_v27 = vunpack.i.h.bf16 %v2861_v26  ;;  %v2862_v11 = vunpack.i.l.bf16 %v2861_v26 }
 0x19d   :  { %2361 = vmatprep.subr.bf16.mxu1 %v2360_v12 }
 0x19e   :  { %v1453_v61 = vsel %vm96_vm0, %v2867_v31, %v2852_v53  ;;  %v1455_v20 = vsel %vm96_vm0, %v2868_v7, %v2857_v29  ;;  %v791_v16 = vsel %vm96_vm0, %v2863_v27, %v2847_v22  ;;  %v789_v58 = vsel %vm96_vm0, %v2862_v11, %v2842_v19 }
 0x19f   :  { %v2362_v10 = vpack.c.bf16 %v1455_v20, %v1453_v61  ;;  %v2290_v23 = vpack.c.bf16 %v791_v16, %v789_v58 }
 0x1a1   :  { %2291 = vmatpush1.bf16.msra.mxu0 %v2290_v23  ;;  %2363 = vmatpush1.bf16.msra.mxu1 %v2362_v10 }
 0x1a4   :  { %2204 = vmatmul.mubr.msk.f32.vlgmr.msra.gmra.mrb[0].mxu0 %vm1629_vm8, %v1475_v25  ;;  %2208 = vmatmul.mubr.msk.f32.vlgmr.msra.gmra.mrb[0].mxu1 %vm1629_vm8, %v1475_v25 }
 0x1a5   :  { %1801 = vmatprep.mubr.f32.mxu0 %v3958_v13  ;;  %1979 = vmatprep.mubr.f32.mxu1 %v3958_v13 }
 0x1a8   :  { %2205 = vmatmul.mubr.msk.f32.gmra.mrb[2].mxu0 %vm1629_vm8, %v1478_v9  ;;  %2209 = vmatmul.mubr.msk.f32.gmra.mrb[2].mxu1 %vm1629_vm8, %v1478_v9 }
 0x1a9   :  { %1807 = vmatprep.mubr.f32.mxu0 %v3958_v13  ;;  %1985 = vmatprep.mubr.f32.mxu1 %v3958_v13 }
 0x1ac   :  { %2206 = vmatmul.mubr.msk.f32.gmra.mrb[4].mxu0 %vm1629_vm8, %v1481_v8  ;;  %2210 = vmatmul.mubr.msk.f32.gmra.mrb[4].mxu1 %vm1629_vm8, %v1481_v8 }
 0x1ad   :  { %1813 = vmatprep.mubr.f32.mxu0 %v3958_v13  ;;  %1991 = vmatprep.mubr.f32.mxu1 %v3958_v13 }
 0x1b0   :  { %2207 = vmatmul.mubr.msk.f32.gmra.mrb[6].mxu0 %vm1629_vm8, %v1484_v1  ;;  %2211 = vmatmul.mubr.msk.f32.gmra.mrb[6].mxu1 %vm1629_vm8, %v1484_v1 }
 0x277   :  { %v1797_v34 = vpop.f32.mrb[0].mxu0  ;;  %v1975_v55 = vpop.f32.mrb[0].mxu1 }
 0x278   :  { %v1799_v46 = vpop.f32.mrb[1].mxu0  ;;  %v1977_v56 = vpop.f32.mrb[1].mxu1 }
 0x279   :  { %v1998_v35 = vadd.f32 %v1799_v46, %v1797_v34  ;;  %v2094_v6 = vadd.f32 %v1977_v56, %v1975_v55 }
 0x27b   :  { %2095 = vadd.xlane.f32.xlu1 %v2094_v6  ;;  %v1981_v47 = vpop.f32.mrb[2].mxu1  ;;  %1999 = vadd.xlane.f32.xlu0 %v1998_v35  ;;  %v1803_v21 = vpop.f32.mrb[2].mxu0 }
 0x27c   :  { %v1805_v28 = vpop.f32.mrb[3].mxu0  ;;  %v1983_v59 = vpop.f32.mrb[3].mxu1 }
 0x27d   :  { %v2001_v33 = vadd.f32 %v1805_v28, %v1803_v21  ;;  %v2097_v41 = vadd.f32 %v1983_v59, %v1981_v47 }
 0x27f   :  { %v1987_v36 = vpop.f32.mrb[4].mxu1  ;;  %2098 = vadd.xlane.f32.xlu0 %v2097_v41  ;;  %2002 = vadd.xlane.f32.xlu1 %v2001_v33  ;;  %v1809_v38 = vpop.f32.mrb[4].mxu0 }
 0x280   :  { %v1811_v48 = vpop.f32.mrb[5].mxu0  ;;  %v1989_v5 = vpop.f32.mrb[5].mxu1 }
 0x281   :  { %v2004_v52 = vadd.f32 %v1811_v48, %v1809_v38  ;;  %v2100_v24 = vadd.f32 %v1989_v5, %v1987_v36 }
 0x283   :  { %v3791_v0 = vpop.f32.mrb[6].mxu1  ;;  %2101 = vadd.xlane.f32.xlu1 %v2100_v24  ;;  %2005 = vadd.xlane.f32.xlu0 %v2004_v52  ;;  %v1815_v54 = vpop.f32.mrb[6].mxu0 }
 0x284   :  { %v1817_v14 = vpop.f32.mrb[7].mxu0  ;;  %v1995_v44 = vpop.f32.mrb[7].mxu1 }
 0x285   :  { %v2007_v30 = vadd.f32 %v1817_v14, %v1815_v54  ;;  %v2103_v40 = vadd.f32 %v1995_v44, %v3791_v0 }
 0x287   :  { %2008 = vadd.xlane.f32.xlu0 %v2007_v30 }
 0x28b   :  { %2104 = vadd.xlane.f32.xlu0 %v2103_v40 }
 0x308   :  { %v2096_v49 = vpop.xlane.xlu1 %2095  ;;  %v2000_v57 = vpop.xlane.xlu0 %1999 }
 0x309   :  { %v2106_v15 = vmul.f32 0.00390625, %v2096_v49  ;;  %v2010_v51 = vmul.f32 0.00390625, %v2000_v57 }
 0x30b   :  { %v3794_v32 = vsub.f32 %v1975_v55, %v2106_v15  ;;  %v3796_v43 = vsub.f32 %v1977_v56, %v2106_v15  ;;  %v3798_v63 = vsub.f32 %v1797_v34, %v2010_v51  ;;  %v3800_v22 = vsub.f32 %v1799_v46, %v2010_v51 }
 0x30c   :  { %v2099_v45 = vpop.xlane.xlu0 %2098  ;;  %v2003_v19 = vpop.xlane.xlu1 %2002 }
 0x30d   :  { %v2022_v17 = vmul.f32 %v3798_v63, %v3798_v63  ;;  %v2023_v60 = vmul.f32 %v3800_v22, %v3800_v22  ;;  %v2118_v3 = vmul.f32 %v3794_v32, %v3794_v32  ;;  %v2119_v2 = vmul.f32 %v3796_v43, %v3796_v43 }
 0x30e   :  { %v2107_v4 = vmul.f32 0.00390625, %v2099_v45  ;;  %v2011_v39 = vmul.f32 0.00390625, %v2003_v19 }
 0x30f   :  { %v2030_v18 = vadd.f32 %v2023_v60, %v2022_v17  ;;  %v2126_v31 = vadd.f32 %v2119_v2, %v2118_v3 }
 0x310   :  { %v3810_v29 = vsub.f32 %v1981_v47, %v2107_v4  ;;  %v3812_v42 = vsub.f32 %v1983_v59, %v2107_v4  ;;  %v3814_v53 = vsub.f32 %v1803_v21, %v2011_v39  ;;  %v3816_v13 = vsub.f32 %v1805_v28, %v2011_v39  ;;  %v2102_v62 = vpop.xlane.xlu1 %2101  ;;  %v2006_v37 = vpop.xlane.xlu0 %2005 }
 0x311   :  { %v2108_v50 = vmul.f32 0.00390625, %v2102_v62  ;;  %v2012_v26 = vmul.f32 0.00390625, %v2006_v37  ;;  %2031 = vadd.xlane.f32.xlu1 %v2030_v18 }
 0x312   :  { %v2024_v12 = vmul.f32 %v3814_v53, %v3814_v53  ;;  %v2025_v7 = vmul.f32 %v3816_v13, %v3816_v13  ;;  %v2120_v16 = vmul.f32 %v3810_v29, %v3810_v29  ;;  %v2121_v58 = vmul.f32 %v3812_v42, %v3812_v42 }
 0x313   :  { %v3822_v27 = vsub.f32 %v1987_v36, %v2108_v50  ;;  %v3824_v11 = vsub.f32 %v1989_v5, %v2108_v50  ;;  %v3826_v61 = vsub.f32 %v1809_v38, %v2012_v26  ;;  %v3828_v20 = vsub.f32 %v1811_v48, %v2012_v26 }
 0x314   :  { %v2009_v10 = vpop.xlane.xlu0 %2008  ;;  %v2033_v23 = vadd.f32 %v2025_v7, %v2024_v12  ;;  %v2129_v6 = vadd.f32 %v2121_v58, %v2120_v16 }
 0x315   :  { %v2026_v25 = vmul.f32 %v3826_v61, %v3826_v61  ;;  %v2027_v9 = vmul.f32 %v3828_v20, %v3828_v20  ;;  %2127 = vadd.xlane.f32.xlu1 %v2126_v31  ;;  %v2013_v8 = vmul.f32 0.00390625, %v2009_v10  ;;  %v2122_v1 = vmul.f32 %v3822_v27, %v3822_v27 }
 0x316   :  { %2034 = vadd.xlane.f32.xlu0 %v2033_v23  ;;  %v2123_v34 = vmul.f32 %v3824_v11, %v3824_v11 }
 0x317   :  { %v2036_v55 = vadd.f32 %v2027_v9, %v2026_v25  ;;  %v3842_v46 = vsub.f32 %v1815_v54, %v2013_v8  ;;  %v3844_v56 = vsub.f32 %v1817_v14, %v2013_v8 }
 0x318   :  { %v2105_v35 = vpop.xlane.xlu0 %2104  ;;  %v2132_v41 = vadd.f32 %v2123_v34, %v2122_v1 }
 0x319   :  { %v2109_v47 = vmul.f32 0.00390625, %v2105_v35  ;;  %2037 = vadd.xlane.f32.xlu1 %v2036_v55  ;;  %v2028_v21 = vmul.f32 %v3842_v46, %v3842_v46  ;;  %v2029_v28 = vmul.f32 %v3844_v56, %v3844_v56 }
 0x31a   :  { %2130 = vadd.xlane.f32.xlu0 %v2129_v6 }
 0x31b   :  { %v3851_v59 = vsub.f32 %v3791_v0, %v2109_v47  ;;  %v3853_v33 = vsub.f32 %v1995_v44, %v2109_v47  ;;  %v2039_v36 = vadd.f32 %v2029_v28, %v2028_v21 }
 0x31d   :  { %v2124_v38 = vmul.f32 %v3851_v59, %v3851_v59  ;;  %v2125_v48 = vmul.f32 %v3853_v33, %v3853_v33  ;;  %2133 = vadd.xlane.f32.xlu1 %v2132_v41 }
 0x31e   :  { %2040 = vadd.xlane.f32.xlu0 %v2039_v36 }
 0x31f   :  { %v2135_v5 = vadd.f32 %v2125_v48, %v2124_v38 }
 0x322   :  { %2136 = vadd.xlane.f32.xlu0 %v2135_v5 }
 0x39e   :  { %v2032_v52 = vpop.xlane.xlu1 %2031 }
 0x39f   :  { %v2042_v24 = vmul.f32 0.00390625, %v2032_v52 }
 0x3a1   :  { %v2046_v54 = vadd.f32 1e-05, %v2042_v24 }
 0x3a2   :  { %v2128_v14 = vpop.xlane.xlu1 %2127 }
 0x3a3   :  { %2869 = vrsqrt.f32 %v2046_v54  ;;  %v2138_v0 = vmul.f32 0.00390625, %v2128_v14  ;;  %v2035_v44 = vpop.xlane.xlu0 %2034 }
 0x3a4   :  { %v2043_v30 = vmul.f32 0.00390625, %v2035_v44 }
 0x3a5   :  { %v2142_v40 = vadd.f32 1e-05, %v2138_v0 }
 0x3a6   :  { %v2047_v49 = vadd.f32 1e-05, %v2043_v30  ;;  %v2038_v57 = vpop.xlane.xlu1 %2037 }
 0x3a7   :  { %2871 = vrsqrt.f32 %v2142_v40  ;;  %v2044_v15 = vmul.f32 0.00390625, %v2038_v57  ;;  %v2131_v51 = vpop.xlane.xlu0 %2130 }
 0x3a8   :  { %2873 = vrsqrt.f32 %v2047_v49  ;;  %v2139_v45 = vmul.f32 0.00390625, %v2131_v51 }
 0x3a9   :  { %v2048_v19 = vadd.f32 1e-05, %v2044_v15 }
 0x3aa   :  { %v2143_v17 = vadd.f32 1e-05, %v2139_v45  ;;  %v2134_v60 = vpop.xlane.xlu1 %2133 }
 0x3ab   :  { %2875 = vrsqrt.f32 %v2048_v19  ;;  %v2140_v3 = vmul.f32 0.00390625, %v2134_v60  ;;  %v2041_v2 = vpop.xlane.xlu0 %2040 }
 0x3ac   :  { %2877 = vrsqrt.f32 %v2143_v17  ;;  %v2045_v4 = vmul.f32 0.00390625, %v2041_v2 }
 0x3ad   :  { %v2870_v39 = vpop.eup %2869  ;;  %v2144_v18 = vadd.f32 1e-05, %v2140_v3 }
 0x3ae   :  { %v2054_v62 = vmul.f32 %v2870_v39, %v3798_v63  ;;  %v2055_v37 = vmul.f32 %v2870_v39, %v3800_v22  ;;  %v2049_v50 = vadd.f32 1e-05, %v2045_v4 }
 0x3af   :  { %2879 = vrsqrt.f32 %v2144_v18  ;;  %v2137_v26 = vpop.xlane.xlu0 %2136 }
 0x3b0   :  { %vm2062_vm9 = vcmp.ge.f32.partialorder %v2054_v62, 0.0  ;;  %vm2063_vm10 = vcmp.ge.f32.partialorder %v2055_v37, 0.0  ;;  %v2070_v12 = vmul.f32 0.1, %v2054_v62  ;;  %v2071_v7 = vmul.f32 0.1, %v2055_v37 }
 0x3b1   :  { %v2872_v31 = vpop.eup %2871  ;;  %2881 = vrsqrt.f32 %v2049_v50  ;;  %v2141_v16 = vmul.f32 0.00390625, %v2137_v26 }
 0x3b2   :  { %v2874_v58 = vpop.eup %2873  ;;  %v2078_v10 = vsel %vm2062_vm9, %v2054_v62, %v2070_v12  ;;  %v2079_v23 = vsel %vm2063_vm10, %v2055_v37, %v2071_v7  ;;  %v2150_v25 = vmul.f32 %v2872_v31, %v3794_v32  ;;  %v2151_v9 = vmul.f32 %v2872_v31, %v3796_v43 }
 0x3b3   :  { %2086 = vst [vmem:[%s3927_s4] sm:$0xff] %v2078_v10  ;;  %2087 = vst [vmem:[%s3927_s4 + $0x8] sm:$0xff] %v2079_v23  ;;  %v2056_v63 = vmul.f32 %v2874_v58, %v3814_v53  ;;  %v2057_v22 = vmul.f32 %v2874_v58, %v3816_v13  ;;  %v2145_v8 = vadd.f32 1e-05, %v2141_v16 }
 0x3b4   :  { %vm2158_vm11 = vcmp.ge.f32.partialorder %v2150_v25, 0.0  ;;  %vm2159_vm12 = vcmp.ge.f32.partialorder %v2151_v9, 0.0  ;;  %v2166_v1 = vmul.f32 0.1, %v2150_v25  ;;  %v2167_v34 = vmul.f32 0.1, %v2151_v9 }
 0x3b5   :  { %v2876_v32 = vpop.eup %2875  ;;  %vm2064_vm13 = vcmp.ge.f32.partialorder %v2056_v63, 0.0  ;;  %vm2065_vm14 = vcmp.ge.f32.partialorder %v2057_v22, 0.0  ;;  %v2072_v43 = vmul.f32 0.1, %v2056_v63  ;;  %v2073_v55 = vmul.f32 0.1, %v2057_v22 }
 0x3b6   :  { %v2878_v35 = vpop.eup %2877  ;;  %v2174_v6 = vsel %vm2158_vm11, %v2150_v25, %v2166_v1  ;;  %v2175_v47 = vsel %vm2159_vm12, %v2151_v9, %v2167_v34  ;;  %v2058_v21 = vmul.f32 %v2876_v32, %v3826_v61  ;;  %v2059_v28 = vmul.f32 %v2876_v32, %v3828_v20 }
 0x3b7   :  { %2212 = vst [vmem:[%s3927_s4 + $0x40] sm:$0xff] %v2174_v6  ;;  %2213 = vst [vmem:[%s3927_s4 + $0x48] sm:$0xff] %v2175_v47  ;;  %v2080_v53 = vsel %vm2064_vm13, %v2056_v63, %v2072_v43  ;;  %v2081_v13 = vsel %vm2065_vm14, %v2057_v22, %v2073_v55  ;;  %v2152_v41 = vmul.f32 %v2878_v35, %v3810_v29  ;;  %2883 = vrsqrt.f32 %v2145_v8 }
 0x3b8   :  { %v2153_v36 = vmul.f32 %v2878_v35, %v3812_v42  ;;  %2088 = vst [vmem:[%s3927_s4 + $0x10] sm:$0xff] %v2080_v53  ;;  %2089 = vst [vmem:[%s3927_s4 + $0x18] sm:$0xff] %v2081_v13  ;;  %vm2066_vm15 = vcmp.ge.f32.partialorder %v2058_v21, 0.0  ;;  %vm2067_vm0 = vcmp.ge.f32.partialorder %v2059_v28, 0.0  ;;  %v2074_v61 = vmul.f32 0.1, %v2058_v21 }
 0x3b9   :  { %v2075_v20 = vmul.f32 0.1, %v2059_v28  ;;  %v2880_v38 = vpop.eup %2879  ;;  %vm2160_vm1 = vcmp.ge.f32.partialorder %v2152_v41, 0.0  ;;  %v2168_v48 = vmul.f32 0.1, %v2152_v41 }
 0x3ba   :  { %vm2161_vm2 = vcmp.ge.f32.partialorder %v2153_v36, 0.0  ;;  %v2169_v5 = vmul.f32 0.1, %v2153_v36  ;;  %v2082_v29 = vsel %vm2066_vm15, %v2058_v21, %v2074_v61  ;;  %v2154_v42 = vmul.f32 %v2880_v38, %v3822_v27 }
 0x3bb   :  { %v2083_v52 = vsel %vm2067_vm0, %v2059_v28, %v2075_v20  ;;  %v2155_v24 = vmul.f32 %v2880_v38, %v3824_v11  ;;  %v2882_v54 = vpop.eup %2881  ;;  %2090 = vst [vmem:[%s3927_s4 + $0x20] sm:$0xff] %v2082_v29  ;;  %v2176_v14 = vsel %vm2160_vm1, %v2152_v41, %v2168_v48 }
 0x3bc   :  { %2091 = vst [vmem:[%s3927_s4 + $0x28] sm:$0xff] %v2083_v52  ;;  %v2177_v0 = vsel %vm2161_vm2, %v2153_v36, %v2169_v5  ;;  %2214 = vst [vmem:[%s3927_s4 + $0x50] sm:$0xff] %v2176_v14  ;;  %vm2162_vm3 = vcmp.ge.f32.partialorder %v2154_v42, 0.0  ;;  %v2170_v27 = vmul.f32 0.1, %v2154_v42  ;;  %v2060_v44 = vmul.f32 %v2882_v54, %v3842_v46 }
 0x3bd   :  { %2215 = vst [vmem:[%s3927_s4 + $0x58] sm:$0xff] %v2177_v0  ;;  %vm2163_vm4 = vcmp.ge.f32.partialorder %v2155_v24, 0.0  ;;  %v2171_v11 = vmul.f32 0.1, %v2155_v24  ;;  %v2061_v30 = vmul.f32 %v2882_v54, %v3844_v56 }
 0x3be   :  { %v2178_v40 = vsel %vm2162_vm3, %v2154_v42, %v2170_v27  ;;  %vm2068_vm5 = vcmp.ge.f32.partialorder %v2060_v44, 0.0  ;;  %v2076_v57 = vmul.f32 0.1, %v2060_v44 }
 0x3bf   :  { %v2179_v49 = vsel %vm2163_vm4, %v2155_v24, %v2171_v11  ;;  %2216 = vst [vmem:[%s3927_s4 + $0x60] sm:$0xff] %v2178_v40  ;;  %vm2069_vm6 = vcmp.ge.f32.partialorder %v2061_v30, 0.0  ;;  %v2077_v15 = vmul.f32 0.1, %v2061_v30 }
 0x3c0   :  { %2217 = vst [vmem:[%s3927_s4 + $0x68] sm:$0xff] %v2179_v49  ;;  %v2084_v51 = vsel %vm2068_vm5, %v2060_v44, %v2076_v57 }
 0x3c1   :  { %v2085_v45 = vsel %vm2069_vm6, %v2061_v30, %v2077_v15  ;;  %2092 = vst [vmem:[%s3927_s4 + $0x30] sm:$0xff] %v2084_v51  ;;  %v2884_v46 = vpop.eup %2883 }
 0x3c2   :  { %2093 = vst [vmem:[%s3927_s4 + $0x38] sm:$0xff] %v2085_v45  ;;  %v2156_v56 = vmul.f32 %v2884_v46, %v3851_v59  ;;  %v2157_v19 = vmul.f32 %v2884_v46, %v3853_v33 }
 0x3c4   :  { %vm2164_vm7 = vcmp.ge.f32.partialorder %v2156_v56, 0.0  ;;  %vm2165_vm8 = vcmp.ge.f32.partialorder %v2157_v19, 0.0  ;;  %v2172_v17 = vmul.f32 0.1, %v2156_v56  ;;  %v2173_v60 = vmul.f32 0.1, %v2157_v19 }
 0x3c6   :  { %v2180_v3 = vsel %vm2164_vm7, %v2156_v56, %v2172_v17  ;;  %v2181_v2 = vsel %vm2165_vm8, %v2157_v19, %v2173_v60 }
 0x3c7   :  { %2218 = vst [vmem:[%s3927_s4 + $0x70] sm:$0xff] %v2180_v3  ;;  %2219 = vst [vmem:[%s3927_s4 + $0x78] sm:$0xff] %v2181_v2 }

</bundles_post_ra>
